<compile_context>
chip_gen: v7x
topology: tpu7x:2x2x1
jax: 0.10.0
libtpu: 0.0.40
codegen_flags: <defaults>
</compile_context>

<pallas_src>
import functools
import math

import jax
import jax.numpy as jnp
from jax.experimental import pallas as pl
from jax.experimental.pallas import tpu as pltpu

# ----------------------- model hyper-parameters (small, synthetic) -----------------------
IDIM = 16          # input feature dim
D_MODEL = 32       # encoder output size (bottleneck feature dim)
N_HEADS = 4
FF_DIM = 64        # linear_units
NUM_BLOCKS = 2
LN_EPS = 1e-5


# ----------------------------------- Pallas kernel ---------------------------------------
def _encoder_kernel(lens_ref,                       # SMEM scalar-prefetch: (B,) int32
                    y2_ref,                         # (T2, F2*D) per-batch block
                    sub_w_ref, sub_b_ref, pe_ref,   # (F2*D, D), (1, D), (T2, D)
                    wqkv_ref, bqkv_ref, wo_ref, bo_ref,
                    ln1g_ref, ln1b_ref, ln2g_ref, ln2b_ref,
                    w1_ref, b1_ref, w2_ref, b2_ref,
                    afg_ref, afb_ref,
                    o_ref,                          # (T2, D) per-batch block
                    *, n_layers, n_heads, eps):
    T2, D = o_ref.shape
    dk = D // n_heads
    scale = 1.0 / math.sqrt(dk)
    b = pl.program_id(0)

    def ln(x, g, beta):
        mean = jnp.mean(x, axis=-1, keepdims=True)
        xc = x - mean
        var = jnp.mean(xc * xc, axis=-1, keepdims=True)
        return xc * jax.lax.rsqrt(var + eps) * g + beta

    # ---- subsampling output linear + scaled absolute positional encoding (fused) ----
    x = jnp.dot(y2_ref[...], sub_w_ref[...],
                preferred_element_type=jnp.float32) + sub_b_ref[...]
    x = x * jnp.float32(math.sqrt(D)) + pe_ref[...]

    # ---- key-padding mask for this batch element, built ONCE as an additive bias ----
    # Subsampled frame t corresponds to original frame 6 + 4*t
    # (wenet: x_mask[:, :, 2::2][:, :, 2::2]).
    col = jax.lax.broadcasted_iota(jnp.int32, (1, T2), 1)
    key_valid = (6 + 4 * col) < lens_ref[b]                          # (1, T2) bool
    bias = jnp.where(key_valid, 0.0, -1e30).astype(jnp.float32)      # (1, T2) additive
    keep = key_valid.astype(jnp.float32)                             # (1, T2) multiplicative

    # ---- transformer layers (pre-norm), fully resident in VMEM/vregs ----
    for l in range(n_layers):
        # self-attention sub-layer
        xn = ln(x, ln1g_ref[l], ln1b_ref[l])
        qkv = jnp.dot(xn, wqkv_ref[l],
                      preferred_element_type=jnp.float32) + bqkv_ref[l]      # (T2, 3D)
        q = jnp.stack([qkv[:, h * dk:(h + 1) * dk] for h in range(n_heads)], axis=0)
        k = jnp.stack([qkv[:, D + h * dk:D + (h + 1) * dk] for h in range(n_heads)], axis=0)
        v = jnp.stack([qkv[:, 2 * D + h * dk:2 * D + (h + 1) * dk] for h in range(n_heads)],
                      axis=0)                                                # (H, T2, dk) each
        s = jnp.einsum('hqd,hkd->hqk', q, k,
                       preferred_element_type=jnp.float32) * scale + bias    # (H, T2, T2)
        smax = jnp.max(s, axis=-1, keepdims=True)
        p = jnp.exp(s - smax) * keep          # padded keys -> exactly 0 (torch masked_fill 0.0)
        denom = jnp.maximum(jnp.sum(p, axis=-1, keepdims=True), jnp.float32(1e-30))
        attn = p * pl.reciprocal(denom, approx=True)
        ctx = jnp.einsum('hqk,hkd->hqd', attn, v,
                         preferred_element_type=jnp.float32)                 # (H, T2, dk)
        ctx = jnp.concatenate([ctx[h] for h in range(n_heads)], axis=-1)     # (T2, D)
        x = x + jnp.dot(ctx, wo_ref[l], preferred_element_type=jnp.float32) + bo_ref[l]

        # feed-forward sub-layer
        xn = ln(x, ln2g_ref[l], ln2b_ref[l])
        hidden = jnp.maximum(
            jnp.dot(xn, w1_ref[l], preferred_element_type=jnp.float32) + b1_ref[l], 0.0)
        x = x + jnp.dot(hidden, w2_ref[l], preferred_element_type=jnp.float32) + b2_ref[l]

    o_ref[...] = ln(x, afg_ref[...], afb_ref[...])


# -------------------------------------- JAX glue ------------------------------------------
def im2col(x, kh=3, kw=3, stride=2):
    """x: (B, T, F, C) -> (B, To, Fo, C*kh*kw), flattened in (cin, kh, kw) order
    (cin slowest) to match PyTorch conv weight.reshape(Cout, -1).  Only kh*kw slices."""
    B, T, F, C = x.shape
    To = (T - kh) // stride + 1
    Fo = (F - kw) // stride + 1
    patches = []
    for i in range(kh):
        for j in range(kw):
            patches.append(x[:, i:i + stride * (To - 1) + 1:stride,
                             j:j + stride * (Fo - 1) + 1:stride, :])     # (B, To, Fo, C)
    p = jnp.stack(patches, axis=-1)                                       # (B, To, Fo, C, kh*kw)
    return p.reshape(B, To, Fo, C * kh * kw)


def sinusoidal_pe(length, d_model):
    pos = jnp.arange(length, dtype=jnp.float32)[:, None]
    div = jnp.exp(jnp.arange(0, d_model, 2, dtype=jnp.float32)
                  * (-math.log(10000.0) / d_model))
    pe = jnp.zeros((length, d_model), dtype=jnp.float32)
    pe = pe.at[:, 0::2].set(jnp.sin(pos * div))
    pe = pe.at[:, 1::2].set(jnp.cos(pos * div))
    return pe


def bnf_forward(params, speech, speech_lengths):
    """BNFModel.forward: return encoder output (bottleneck features) of shape (B, T2, D)."""
    B, T, F = speech.shape
    D = D_MODEL

    # ---- Conv2dSubsampling4 conv stack: im2col + tiny XLA matmuls (no extra pallas launches) ----
    x = speech[..., None]                                   # (B, T, F, 1) NHWC
    p1 = im2col(x)                                          # (B, T1, F1, 9)
    w1c = params["conv1_w"].reshape(D, -1).T                # (9, D)
    y1 = jnp.maximum(jnp.einsum('btfk,kd->btfd', p1, w1c) + params["conv1_b"], 0.0)
    p2 = im2col(y1)                                         # (B, T2, F2, D*9)
    _, T2, F2, _ = p2.shape
    w2c = params["conv2_w"].reshape(D, -1).T                # (D*9, D)
    y2 = jnp.maximum(jnp.einsum('btfk,kd->btfd', p2, w2c) + params["conv2_b"], 0.0)  # (B,T2,F2,D)
    # Natural flatten (freq-major, channel-minor) -- NO transpose here; the reorder is folded
    # into the subsampling linear weight below.
    y2 = y2.reshape(B, T2, F2 * D)

    # torch layout of the linear's input index is c*F2 + f; ours is f*D + c -> permute weight rows.
    sub_w = params["sub_lin_w"].reshape(D, F2, D)           # rows (c, f)
    sub_w = jnp.transpose(sub_w, (1, 0, 2)).reshape(F2 * D, D)   # rows (f, c)
    sub_b = params["sub_lin_b"].reshape(1, D)

    # Stack per-layer weights so the whole encoder is ONE pallas_call.
    layers = params["layers"]
    wqkv = jnp.stack([jnp.concatenate([lp["wq"], lp["wk"], lp["wv"]], axis=1)
                      for lp in layers])                               # (L, D, 3D)
    bqkv = jnp.stack([jnp.concatenate([lp["bq"], lp["bk"], lp["bv"]])[None, :]
                      for lp in layers])                               # (L, 1, 3D)
    wo = jnp.stack([lp["wo"] for lp in layers])                        # (L, D, D)
    bo = jnp.stack([lp["bo"][None, :] for lp in layers])               # (L, 1, D)
    ln1g = jnp.stack([lp["ln1_g"][None, :] for lp in layers])
    ln1b = jnp.stack([lp["ln1_b"][None, :] for lp in layers])
    ln2g = jnp.stack([lp["ln2_g"][None, :] for lp in layers])
    ln2b = jnp.stack([lp["ln2_b"][None, :] for lp in layers])
    w1 = jnp.stack([lp["w1"] for lp in layers])                        # (L, D, FF)
    b1 = jnp.stack([lp["b1"][None, :] for lp in layers])               # (L, 1, FF)
    w2 = jnp.stack([lp["w2"] for lp in layers])                        # (L, FF, D)
    b2 = jnp.stack([lp["b2"][None, :] for lp in layers])               # (L, 1, D)

    pe = sinusoidal_pe(T2, D)                                          # (T2, D)
    lens = speech_lengths.astype(jnp.int32)

    weights = [sub_w, sub_b, pe, wqkv, bqkv, wo, bo,
               ln1g, ln1b, ln2g, ln2b, w1, b1, w2, b2,
               params["after_g"].reshape(1, D), params["after_b"].reshape(1, D)]

    # Weights / PE: whole-array, resident in VMEM, no pipelining / double-buffering.
    weight_spec = pl.BlockSpec(memory_space=pltpu.MemorySpace.VMEM)

    out = pl.pallas_call(
        functools.partial(_encoder_kernel,
                          n_layers=NUM_BLOCKS, n_heads=N_HEADS, eps=LN_EPS),
        out_shape=jax.ShapeDtypeStruct((B, T2, D), jnp.float32),
        grid_spec=pltpu.PrefetchScalarGridSpec(
            num_scalar_prefetch=1,
            grid=(B,),
            in_specs=[pl.BlockSpec((None, T2, F2 * D), lambda b, lens: (b, 0, 0))]
                     + [weight_spec] * len(weights),
            out_specs=pl.BlockSpec((None, T2, D), lambda b, lens: (b, 0, 0)),
        ),
        compiler_params=pltpu.CompilerParams(dimension_semantics=("parallel",)),
    )(lens, y2, *weights)
    return out


# --------------------------------- deterministic params -----------------------------------
def init_params(key):
    keys = iter(jax.random.split(key, 64))

    def nrm(shape, scale=0.1):
        return jax.random.normal(next(keys), shape, dtype=jnp.float32) * scale

    f_sub = ((IDIM - 1) // 2 - 1) // 2
    params = {
        "conv1_w": nrm((D_MODEL, 1, 3, 3)),        # torch layout (Cout, Cin, kh, kw)
        "conv1_b": nrm((D_MODEL,)),
        "conv2_w": nrm((D_MODEL, D_MODEL, 3, 3)),
        "conv2_b": nrm((D_MODEL,)),
        "sub_lin_w": nrm((D_MODEL * f_sub, D_MODEL)),  # stored as (in, out), in-index = c*F2+f
        "sub_lin_b": nrm((D_MODEL,)),
        "after_g": jnp.ones((D_MODEL,), jnp.float32),
        "after_b": jnp.zeros((D_MODEL,), jnp.float32),
    }
    layers = []
    for _ in range(NUM_BLOCKS):
        layers.append({
            "ln1_g": jnp.ones((D_MODEL,), jnp.float32), "ln1_b": jnp.zeros((D_MODEL,), jnp.float32),
            "ln2_g": jnp.ones((D_MODEL,), jnp.float32), "ln2_b": jnp.zeros((D_MODEL,), jnp.float32),
            "wq": nrm((D_MODEL, D_MODEL)), "bq": nrm((D_MODEL,)),
            "wk": nrm((D_MODEL, D_MODEL)), "bk": nrm((D_MODEL,)),
            "wv": nrm((D_MODEL, D_MODEL)), "bv": nrm((D_MODEL,)),
            "wo": nrm((D_MODEL, D_MODEL)), "bo": nrm((D_MODEL,)),
            "w1": nrm((D_MODEL, FF_DIM)), "b1": nrm((FF_DIM,)),
            "w2": nrm((FF_DIM, D_MODEL)), "b2": nrm((D_MODEL,)),
        })
    params["layers"] = layers
    return params


# ------------------------------------------ main ------------------------------------------
if __name__ == "__main__":
    key = jax.random.PRNGKey(0)
    kx, kp = jax.random.split(key)

    B, T = 2, 32
    speech = jax.random.normal(kx, (B, T, IDIM), dtype=jnp.float32)
    speech_lengths = jnp.array([32, 24], dtype=jnp.int32)

    params = init_params(kp)
    bnf = jax.jit(bnf_forward)(params, speech, speech_lengths)
    jax.block_until_ready(bnf)

    T_sub = ((T - 1) // 2 - 1) // 2
    assert bnf.shape == (B, T_sub, D_MODEL), bnf.shape
    assert bool(jnp.all(jnp.isfinite(bnf)))
    print("KERNEL_OK")
</pallas_src>

<mosaic_0001>
module attributes {stable_mosaic.version = 11 : i64} {
  func.func @_encoder_kernel(%arg0: i32, %arg1: memref<2xi32, #tpu.memory_space<smem>>, %arg2: memref<1x7x96xf32, #tpu.memory_space<vmem>>, %arg3: memref<96x32xf32, #tpu.memory_space<vmem>>, %arg4: memref<1x32xf32, #tpu.memory_space<vmem>>, %arg5: memref<7x32xf32, #tpu.memory_space<vmem>>, %arg6: memref<2x32x96xf32, #tpu.memory_space<vmem>>, %arg7: memref<2x1x96xf32, #tpu.memory_space<vmem>>, %arg8: memref<2x32x32xf32, #tpu.memory_space<vmem>>, %arg9: memref<2x1x32xf32, #tpu.memory_space<vmem>>, %arg10: memref<2x1x32xf32, #tpu.memory_space<vmem>>, %arg11: memref<2x1x32xf32, #tpu.memory_space<vmem>>, %arg12: memref<2x1x32xf32, #tpu.memory_space<vmem>>, %arg13: memref<2x1x32xf32, #tpu.memory_space<vmem>>, %arg14: memref<2x32x64xf32, #tpu.memory_space<vmem>>, %arg15: memref<2x1x64xf32, #tpu.memory_space<vmem>>, %arg16: memref<2x64x32xf32, #tpu.memory_space<vmem>>, %arg17: memref<2x1x32xf32, #tpu.memory_space<vmem>>, %arg18: memref<1x32xf32, #tpu.memory_space<vmem>>, %arg19: memref<1x32xf32, #tpu.memory_space<vmem>>, %arg20: memref<1x7x32xf32, #tpu.memory_space<vmem>>) attributes {dimension_semantics = [#tpu.dimension_semantics<parallel>], iteration_bounds = array<i64: 2>, scalar_prefetch = 1 : i64, scratch_operands = 0 : i64, tpu.core_type = #tpu.core_type<tc>, window_params = [{transform_indices = @transform_0, window_bounds = array<i64: 1, 7, 96>}, {pipeline_mode = #tpu.pipeline_mode<synchronous>, transform_indices = @transform_1, window_bounds = array<i64: 96, 32>}, {pipeline_mode = #tpu.pipeline_mode<synchronous>, transform_indices = @transform_2, window_bounds = array<i64: 1, 32>}, {pipeline_mode = #tpu.pipeline_mode<synchronous>, transform_indices = @transform_3, window_bounds = array<i64: 7, 32>}, {pipeline_mode = #tpu.pipeline_mode<synchronous>, transform_indices = @transform_4, window_bounds = array<i64: 2, 32, 96>}, {pipeline_mode = #tpu.pipeline_mode<synchronous>, transform_indices = @transform_5, window_bounds = array<i64: 2, 1, 96>}, {pipeline_mode = #tpu.pipeline_mode<synchronous>, transform_indices = @transform_6, window_bounds = array<i64: 2, 32, 32>}, {pipeline_mode = #tpu.pipeline_mode<synchronous>, transform_indices = @transform_7, window_bounds = array<i64: 2, 1, 32>}, {pipeline_mode = #tpu.pipeline_mode<synchronous>, transform_indices = @transform_8, window_bounds = array<i64: 2, 1, 32>}, {pipeline_mode = #tpu.pipeline_mode<synchronous>, transform_indices = @transform_9, window_bounds = array<i64: 2, 1, 32>}, {pipeline_mode = #tpu.pipeline_mode<synchronous>, transform_indices = @transform_10, window_bounds = array<i64: 2, 1, 32>}, {pipeline_mode = #tpu.pipeline_mode<synchronous>, transform_indices = @transform_11, window_bounds = array<i64: 2, 1, 32>}, {pipeline_mode = #tpu.pipeline_mode<synchronous>, transform_indices = @transform_12, window_bounds = array<i64: 2, 32, 64>}, {pipeline_mode = #tpu.pipeline_mode<synchronous>, transform_indices = @transform_13, window_bounds = array<i64: 2, 1, 64>}, {pipeline_mode = #tpu.pipeline_mode<synchronous>, transform_indices = @transform_14, window_bounds = array<i64: 2, 64, 32>}, {pipeline_mode = #tpu.pipeline_mode<synchronous>, transform_indices = @transform_15, window_bounds = array<i64: 2, 1, 32>}, {pipeline_mode = #tpu.pipeline_mode<synchronous>, transform_indices = @transform_16, window_bounds = array<i64: 1, 32>}, {pipeline_mode = #tpu.pipeline_mode<synchronous>, transform_indices = @transform_17, window_bounds = array<i64: 1, 32>}, {transform_indices = @transform_18, window_bounds = array<i64: 1, 7, 32>}]} {
    %c0 = arith.constant 0 : index
    %c0_0 = arith.constant 0 : index
    %c0_1 = arith.constant 0 : index
    %0 = vector.load %arg2[%c0, %c0_0, %c0_1] : memref<1x7x96xf32, #tpu.memory_space<vmem>>, vector<1x7x96xf32>
    %1 = vector.shape_cast %0 : vector<1x7x96xf32> to vector<7x96xf32>
    %c0_2 = arith.constant 0 : index
    %c0_3 = arith.constant 0 : index
    %2 = vector.load %arg3[%c0_2, %c0_3] : memref<96x32xf32, #tpu.memory_space<vmem>>, vector<96x32xf32>
    %cst = arith.constant dense<0.000000e+00> : vector<7x32xf32>
    %3 = tpu.matmul %1, %2, %cst {dimension_numbers = #tpu.dot_dimension_numbers<[1], [0], [0], [1], [0, 0, 1, 1], [], []>} : vector<7x96xf32>, vector<96x32xf32>, vector<7x32xf32> -> vector<7x32xf32>
    %c0_4 = arith.constant 0 : index
    %c0_5 = arith.constant 0 : index
    %4 = vector.load %arg4[%c0_4, %c0_5] : memref<1x32xf32, #tpu.memory_space<vmem>>, vector<1x32xf32>
    %5 = vector.broadcast %4 : vector<1x32xf32> to vector<7x32xf32>
    %6 = arith.addf %3, %5 : vector<7x32xf32>
    %cst_6 = arith.constant 5.65685415 : f32
    %7 = vector.broadcast %cst_6 : f32 to vector<7x32xf32>
    %8 = arith.mulf %6, %7 : vector<7x32xf32>
    %c0_7 = arith.constant 0 : index
    %c0_8 = arith.constant 0 : index
    %9 = vector.load %arg5[%c0_7, %c0_8] : memref<7x32xf32, #tpu.memory_space<vmem>>, vector<7x32xf32>
    %10 = arith.addf %8, %9 : vector<7x32xf32>
    %11 = tpu.iota {dimensions = array<i32: 1>} : vector<1x7xi32>
    %c4_i32 = arith.constant 4 : i32
    %12 = vector.broadcast %c4_i32 : i32 to vector<1x7xi32>
    %13 = arith.muli %12, %11 : vector<1x7xi32>
    %c6_i32 = arith.constant 6 : i32
    %14 = vector.broadcast %c6_i32 : i32 to vector<1x7xi32>
    %15 = arith.addi %14, %13 : vector<1x7xi32>
    %16 = arith.index_cast %arg0 : i32 to index
    %17 = memref.load %arg1[%16] : memref<2xi32, #tpu.memory_space<smem>>
    %18 = vector.broadcast %17 : i32 to vector<1x7xi32>
    %19 = arith.cmpi slt, %15, %18 : vector<1x7xi32>
    %cst_9 = arith.constant 0.000000e+00 : f32
    %cst_10 = arith.constant -1.000000e+30 : f32
    %20 = vector.broadcast %cst_9 : f32 to vector<1x7xf32>
    %21 = vector.broadcast %cst_10 : f32 to vector<1x7xf32>
    %22 = arith.select %19, %20, %21 : vector<1x7xi1>, vector<1x7xf32>
    %23 = arith.extui %19 : vector<1x7xi1> to vector<1x7xi32>
    %24 = arith.sitofp %23 : vector<1x7xi32> to vector<1x7xf32>
    %c0_11 = arith.constant 0 : index
    %c0_12 = arith.constant 0 : index
    %c0_13 = arith.constant 0 : index
    %25 = vector.load %arg10[%c0_11, %c0_12, %c0_13] : memref<2x1x32xf32, #tpu.memory_space<vmem>>, vector<1x1x32xf32>
    %26 = vector.shape_cast %25 : vector<1x1x32xf32> to vector<1x32xf32>
    %c0_14 = arith.constant 0 : index
    %c0_15 = arith.constant 0 : index
    %c0_16 = arith.constant 0 : index
    %27 = vector.load %arg11[%c0_14, %c0_15, %c0_16] : memref<2x1x32xf32, #tpu.memory_space<vmem>>, vector<1x1x32xf32>
    %28 = vector.shape_cast %27 : vector<1x1x32xf32> to vector<1x32xf32>
    %cst_17 = arith.constant dense<0.000000e+00> : vector<7xf32>
    %29 = vector.multi_reduction <add>, %10, %cst_17 [1] : vector<7x32xf32> to vector<7xf32>
    %30 = vector.shape_cast %29 : vector<7xf32> to vector<7x1xf32>
    %cst_18 = arith.constant 3.200000e+01 : f32
    %31 = vector.broadcast %cst_18 : f32 to vector<7x1xf32>
    %32 = arith.divf %30, %31 : vector<7x1xf32>
    %33 = vector.broadcast %32 : vector<7x1xf32> to vector<7x32xf32>
    %34 = arith.subf %10, %33 : vector<7x32xf32>
    %35 = arith.mulf %34, %34 : vector<7x32xf32>
    %cst_19 = arith.constant dense<0.000000e+00> : vector<7xf32>
    %36 = vector.multi_reduction <add>, %35, %cst_19 [1] : vector<7x32xf32> to vector<7xf32>
    %37 = vector.shape_cast %36 : vector<7xf32> to vector<7x1xf32>
    %cst_20 = arith.constant 3.200000e+01 : f32
    %38 = vector.broadcast %cst_20 : f32 to vector<7x1xf32>
    %39 = arith.divf %37, %38 : vector<7x1xf32>
    %cst_21 = arith.constant 9.99999974E-6 : f32
    %40 = vector.broadcast %cst_21 : f32 to vector<7x1xf32>
    %41 = arith.addf %39, %40 : vector<7x1xf32>
    %42 = math.rsqrt %41 : vector<7x1xf32>
    %43 = vector.broadcast %42 : vector<7x1xf32> to vector<7x32xf32>
    %44 = arith.mulf %34, %43 : vector<7x32xf32>
    %45 = vector.broadcast %26 : vector<1x32xf32> to vector<7x32xf32>
    %46 = arith.mulf %44, %45 : vector<7x32xf32>
    %47 = vector.broadcast %28 : vector<1x32xf32> to vector<7x32xf32>
    %48 = arith.addf %46, %47 : vector<7x32xf32>
    %c0_22 = arith.constant 0 : index
    %c0_23 = arith.constant 0 : index
    %c0_24 = arith.constant 0 : index
    %49 = vector.load %arg6[%c0_22, %c0_23, %c0_24] : memref<2x32x96xf32, #tpu.memory_space<vmem>>, vector<1x32x96xf32>
    %50 = vector.shape_cast %49 : vector<1x32x96xf32> to vector<32x96xf32>
    %cst_25 = arith.constant dense<0.000000e+00> : vector<7x96xf32>
    %51 = tpu.matmul %48, %50, %cst_25 {dimension_numbers = #tpu.dot_dimension_numbers<[1], [0], [0], [1], [0, 0, 1, 1], [], []>} : vector<7x32xf32>, vector<32x96xf32>, vector<7x96xf32> -> vector<7x96xf32>
    %c0_26 = arith.constant 0 : index
    %c0_27 = arith.constant 0 : index
    %c0_28 = arith.constant 0 : index
    %52 = vector.load %arg7[%c0_26, %c0_27, %c0_28] : memref<2x1x96xf32, #tpu.memory_space<vmem>>, vector<1x1x96xf32>
    %53 = vector.shape_cast %52 : vector<1x1x96xf32> to vector<1x96xf32>
    %54 = vector.broadcast %53 : vector<1x96xf32> to vector<7x96xf32>
    %55 = arith.addf %51, %54 : vector<7x96xf32>
    %56 = vector.extract_strided_slice %55 {offsets = [0, 0], sizes = [7, 8], strides = [1, 1]} : vector<7x96xf32> to vector<7x8xf32>
    %57 = vector.extract_strided_slice %55 {offsets = [0, 8], sizes = [7, 8], strides = [1, 1]} : vector<7x96xf32> to vector<7x8xf32>
    %58 = vector.extract_strided_slice %55 {offsets = [0, 16], sizes = [7, 8], strides = [1, 1]} : vector<7x96xf32> to vector<7x8xf32>
    %59 = vector.extract_strided_slice %55 {offsets = [0, 24], sizes = [7, 8], strides = [1, 1]} : vector<7x96xf32> to vector<7x8xf32>
    %60 = vector.shape_cast %56 : vector<7x8xf32> to vector<1x7x8xf32>
    %61 = vector.shape_cast %57 : vector<7x8xf32> to vector<1x7x8xf32>
    %62 = vector.shape_cast %58 : vector<7x8xf32> to vector<1x7x8xf32>
    %63 = vector.shape_cast %59 : vector<7x8xf32> to vector<1x7x8xf32>
    %64 = tpu.concatenate %60, %61, %62, %63 in 0 : vector<1x7x8xf32>, vector<1x7x8xf32>, vector<1x7x8xf32>, vector<1x7x8xf32> -> vector<4x7x8xf32>
    %65 = vector.extract_strided_slice %55 {offsets = [0, 32], sizes = [7, 8], strides = [1, 1]} : vector<7x96xf32> to vector<7x8xf32>
    %66 = vector.extract_strided_slice %55 {offsets = [0, 40], sizes = [7, 8], strides = [1, 1]} : vector<7x96xf32> to vector<7x8xf32>
    %67 = vector.extract_strided_slice %55 {offsets = [0, 48], sizes = [7, 8], strides = [1, 1]} : vector<7x96xf32> to vector<7x8xf32>
    %68 = vector.extract_strided_slice %55 {offsets = [0, 56], sizes = [7, 8], strides = [1, 1]} : vector<7x96xf32> to vector<7x8xf32>
    %69 = vector.shape_cast %65 : vector<7x8xf32> to vector<1x7x8xf32>
    %70 = vector.shape_cast %66 : vector<7x8xf32> to vector<1x7x8xf32>
    %71 = vector.shape_cast %67 : vector<7x8xf32> to vector<1x7x8xf32>
    %72 = vector.shape_cast %68 : vector<7x8xf32> to vector<1x7x8xf32>
    %73 = tpu.concatenate %69, %70, %71, %72 in 0 : vector<1x7x8xf32>, vector<1x7x8xf32>, vector<1x7x8xf32>, vector<1x7x8xf32> -> vector<4x7x8xf32>
    %74 = vector.extract_strided_slice %55 {offsets = [0, 64], sizes = [7, 8], strides = [1, 1]} : vector<7x96xf32> to vector<7x8xf32>
    %75 = vector.extract_strided_slice %55 {offsets = [0, 72], sizes = [7, 8], strides = [1, 1]} : vector<7x96xf32> to vector<7x8xf32>
    %76 = vector.extract_strided_slice %55 {offsets = [0, 80], sizes = [7, 8], strides = [1, 1]} : vector<7x96xf32> to vector<7x8xf32>
    %77 = vector.extract_strided_slice %55 {offsets = [0, 88], sizes = [7, 8], strides = [1, 1]} : vector<7x96xf32> to vector<7x8xf32>
    %78 = vector.shape_cast %74 : vector<7x8xf32> to vector<1x7x8xf32>
    %79 = vector.shape_cast %75 : vector<7x8xf32> to vector<1x7x8xf32>
    %80 = vector.shape_cast %76 : vector<7x8xf32> to vector<1x7x8xf32>
    %81 = vector.shape_cast %77 : vector<7x8xf32> to vector<1x7x8xf32>
    %82 = tpu.concatenate %78, %79, %80, %81 in 0 : vector<1x7x8xf32>, vector<1x7x8xf32>, vector<1x7x8xf32>, vector<1x7x8xf32> -> vector<4x7x8xf32>
    "tpu.trace_start"() <{level = 10 : i32, message = "hqd,hkd->hqk"}> : () -> ()
    %cst_29 = arith.constant dense<0.000000e+00> : vector<4x7x7xf32>
    %83 = tpu.matmul %64, %73, %cst_29 {dimension_numbers = #tpu.dot_dimension_numbers<[2], [2], [1], [1], [0, 0, 0, 1, 1, 1], [0], [0]>} : vector<4x7x8xf32>, vector<4x7x8xf32>, vector<4x7x7xf32> -> vector<4x7x7xf32>
    "tpu.trace_stop"() : () -> ()
    %cst_30 = arith.constant 0.353553385 : f32
    %84 = vector.broadcast %cst_30 : f32 to vector<4x7x7xf32>
    %85 = arith.mulf %83, %84 : vector<4x7x7xf32>
    %86 = vector.shape_cast %22 : vector<1x7xf32> to vector<1x1x7xf32>
    %87 = vector.broadcast %86 : vector<1x1x7xf32> to vector<4x7x7xf32>
    %88 = arith.addf %85, %87 : vector<4x7x7xf32>
    %cst_31 = arith.constant dense<0xFF800000> : vector<4x7xf32>
    %89 = vector.multi_reduction <maximumf>, %88, %cst_31 [2] : vector<4x7x7xf32> to vector<4x7xf32>
    %90 = vector.shape_cast %89 : vector<4x7xf32> to vector<4x7x1xf32>
    %91 = vector.broadcast %90 : vector<4x7x1xf32> to vector<4x7x7xf32>
    %92 = arith.subf %88, %91 : vector<4x7x7xf32>
    %93 = math.exp %92 : vector<4x7x7xf32>
    %94 = vector.shape_cast %24 : vector<1x7xf32> to vector<1x1x7xf32>
    %95 = vector.broadcast %94 : vector<1x1x7xf32> to vector<4x7x7xf32>
    %96 = arith.mulf %93, %95 : vector<4x7x7xf32>
    %cst_32 = arith.constant dense<0.000000e+00> : vector<4x7xf32>
    %97 = vector.multi_reduction <add>, %96, %cst_32 [2] : vector<4x7x7xf32> to vector<4x7xf32>
    %98 = vector.shape_cast %97 : vector<4x7xf32> to vector<4x7x1xf32>
    %cst_33 = arith.constant 1.000000e-30 : f32
    %99 = vector.broadcast %cst_33 : f32 to vector<4x7x1xf32>
    %100 = arith.maximumf %98, %99 : vector<4x7x1xf32>
    %101 = tpu.reciprocal %100 {approx = true} : vector<4x7x1xf32> -> vector<4x7x1xf32>
    %102 = vector.broadcast %101 : vector<4x7x1xf32> to vector<4x7x7xf32>
    %103 = arith.mulf %96, %102 : vector<4x7x7xf32>
    "tpu.trace_start"() <{level = 10 : i32, message = "hqk,hkd->hqd"}> : () -> ()
    %cst_34 = arith.constant dense<0.000000e+00> : vector<4x7x8xf32>
    %104 = tpu.matmul %103, %82, %cst_34 {dimension_numbers = #tpu.dot_dimension_numbers<[2], [1], [1], [2], [0, 0, 0, 1, 1, 2], [0], [0]>} : vector<4x7x7xf32>, vector<4x7x8xf32>, vector<4x7x8xf32> -> vector<4x7x8xf32>
    "tpu.trace_stop"() : () -> ()
    %105 = vector.extract_strided_slice %104 {offsets = [0, 0, 0], sizes = [1, 7, 8], strides = [1, 1, 1]} : vector<4x7x8xf32> to vector<1x7x8xf32>
    %106 = vector.shape_cast %105 : vector<1x7x8xf32> to vector<7x8xf32>
    %107 = vector.extract_strided_slice %104 {offsets = [1, 0, 0], sizes = [1, 7, 8], strides = [1, 1, 1]} : vector<4x7x8xf32> to vector<1x7x8xf32>
    %108 = vector.shape_cast %107 : vector<1x7x8xf32> to vector<7x8xf32>
    %109 = vector.extract_strided_slice %104 {offsets = [2, 0, 0], sizes = [1, 7, 8], strides = [1, 1, 1]} : vector<4x7x8xf32> to vector<1x7x8xf32>
    %110 = vector.shape_cast %109 : vector<1x7x8xf32> to vector<7x8xf32>
    %111 = vector.extract_strided_slice %104 {offsets = [3, 0, 0], sizes = [1, 7, 8], strides = [1, 1, 1]} : vector<4x7x8xf32> to vector<1x7x8xf32>
    %112 = vector.shape_cast %111 : vector<1x7x8xf32> to vector<7x8xf32>
    %113 = tpu.concatenate %106, %108, %110, %112 in 1 : vector<7x8xf32>, vector<7x8xf32>, vector<7x8xf32>, vector<7x8xf32> -> vector<7x32xf32>
    %c0_35 = arith.constant 0 : index
    %c0_36 = arith.constant 0 : index
    %c0_37 = arith.constant 0 : index
    %114 = vector.load %arg8[%c0_35, %c0_36, %c0_37] : memref<2x32x32xf32, #tpu.memory_space<vmem>>, vector<1x32x32xf32>
    %115 = vector.shape_cast %114 : vector<1x32x32xf32> to vector<32x32xf32>
    %cst_38 = arith.constant dense<0.000000e+00> : vector<7x32xf32>
    %116 = tpu.matmul %113, %115, %cst_38 {dimension_numbers = #tpu.dot_dimension_numbers<[1], [0], [0], [1], [0, 0, 1, 1], [], []>} : vector<7x32xf32>, vector<32x32xf32>, vector<7x32xf32> -> vector<7x32xf32>
    %117 = arith.addf %10, %116 : vector<7x32xf32>
    %c0_39 = arith.constant 0 : index
    %c0_40 = arith.constant 0 : index
    %c0_41 = arith.constant 0 : index
    %118 = vector.load %arg9[%c0_39, %c0_40, %c0_41] : memref<2x1x32xf32, #tpu.memory_space<vmem>>, vector<1x1x32xf32>
    %119 = vector.shape_cast %118 : vector<1x1x32xf32> to vector<1x32xf32>
    %120 = vector.broadcast %119 : vector<1x32xf32> to vector<7x32xf32>
    %121 = arith.addf %117, %120 : vector<7x32xf32>
    %c0_42 = arith.constant 0 : index
    %c0_43 = arith.constant 0 : index
    %c0_44 = arith.constant 0 : index
    %122 = vector.load %arg12[%c0_42, %c0_43, %c0_44] : memref<2x1x32xf32, #tpu.memory_space<vmem>>, vector<1x1x32xf32>
    %123 = vector.shape_cast %122 : vector<1x1x32xf32> to vector<1x32xf32>
    %c0_45 = arith.constant 0 : index
    %c0_46 = arith.constant 0 : index
    %c0_47 = arith.constant 0 : index
    %124 = vector.load %arg13[%c0_45, %c0_46, %c0_47] : memref<2x1x32xf32, #tpu.memory_space<vmem>>, vector<1x1x32xf32>
    %125 = vector.shape_cast %124 : vector<1x1x32xf32> to vector<1x32xf32>
    %cst_48 = arith.constant dense<0.000000e+00> : vector<7xf32>
    %126 = vector.multi_reduction <add>, %121, %cst_48 [1] : vector<7x32xf32> to vector<7xf32>
    %127 = vector.shape_cast %126 : vector<7xf32> to vector<7x1xf32>
    %cst_49 = arith.constant 3.200000e+01 : f32
    %128 = vector.broadcast %cst_49 : f32 to vector<7x1xf32>
    %129 = arith.divf %127, %128 : vector<7x1xf32>
    %130 = vector.broadcast %129 : vector<7x1xf32> to vector<7x32xf32>
    %131 = arith.subf %121, %130 : vector<7x32xf32>
    %132 = arith.mulf %131, %131 : vector<7x32xf32>
    %cst_50 = arith.constant dense<0.000000e+00> : vector<7xf32>
    %133 = vector.multi_reduction <add>, %132, %cst_50 [1] : vector<7x32xf32> to vector<7xf32>
    %134 = vector.shape_cast %133 : vector<7xf32> to vector<7x1xf32>
    %cst_51 = arith.constant 3.200000e+01 : f32
    %135 = vector.broadcast %cst_51 : f32 to vector<7x1xf32>
    %136 = arith.divf %134, %135 : vector<7x1xf32>
    %cst_52 = arith.constant 9.99999974E-6 : f32
    %137 = vector.broadcast %cst_52 : f32 to vector<7x1xf32>
    %138 = arith.addf %136, %137 : vector<7x1xf32>
    %139 = math.rsqrt %138 : vector<7x1xf32>
    %140 = vector.broadcast %139 : vector<7x1xf32> to vector<7x32xf32>
    %141 = arith.mulf %131, %140 : vector<7x32xf32>
    %142 = vector.broadcast %123 : vector<1x32xf32> to vector<7x32xf32>
    %143 = arith.mulf %141, %142 : vector<7x32xf32>
    %144 = vector.broadcast %125 : vector<1x32xf32> to vector<7x32xf32>
    %145 = arith.addf %143, %144 : vector<7x32xf32>
    %c0_53 = arith.constant 0 : index
    %c0_54 = arith.constant 0 : index
    %c0_55 = arith.constant 0 : index
    %146 = vector.load %arg14[%c0_53, %c0_54, %c0_55] : memref<2x32x64xf32, #tpu.memory_space<vmem>>, vector<1x32x64xf32>
    %147 = vector.shape_cast %146 : vector<1x32x64xf32> to vector<32x64xf32>
    %cst_56 = arith.constant dense<0.000000e+00> : vector<7x64xf32>
    %148 = tpu.matmul %145, %147, %cst_56 {dimension_numbers = #tpu.dot_dimension_numbers<[1], [0], [0], [1], [0, 0, 1, 1], [], []>} : vector<7x32xf32>, vector<32x64xf32>, vector<7x64xf32> -> vector<7x64xf32>
    %c0_57 = arith.constant 0 : index
    %c0_58 = arith.constant 0 : index
    %c0_59 = arith.constant 0 : index
    %149 = vector.load %arg15[%c0_57, %c0_58, %c0_59] : memref<2x1x64xf32, #tpu.memory_space<vmem>>, vector<1x1x64xf32>
    %150 = vector.shape_cast %149 : vector<1x1x64xf32> to vector<1x64xf32>
    %151 = vector.broadcast %150 : vector<1x64xf32> to vector<7x64xf32>
    %152 = arith.addf %148, %151 : vector<7x64xf32>
    %cst_60 = arith.constant 0.000000e+00 : f32
    %153 = vector.broadcast %cst_60 : f32 to vector<7x64xf32>
    %154 = arith.maximumf %152, %153 : vector<7x64xf32>
    %c0_61 = arith.constant 0 : index
    %c0_62 = arith.constant 0 : index
    %c0_63 = arith.constant 0 : index
    %155 = vector.load %arg16[%c0_61, %c0_62, %c0_63] : memref<2x64x32xf32, #tpu.memory_space<vmem>>, vector<1x64x32xf32>
    %156 = vector.shape_cast %155 : vector<1x64x32xf32> to vector<64x32xf32>
    %cst_64 = arith.constant dense<0.000000e+00> : vector<7x32xf32>
    %157 = tpu.matmul %154, %156, %cst_64 {dimension_numbers = #tpu.dot_dimension_numbers<[1], [0], [0], [1], [0, 0, 1, 1], [], []>} : vector<7x64xf32>, vector<64x32xf32>, vector<7x32xf32> -> vector<7x32xf32>
    %158 = arith.addf %121, %157 : vector<7x32xf32>
    %c0_65 = arith.constant 0 : index
    %c0_66 = arith.constant 0 : index
    %c0_67 = arith.constant 0 : index
    %159 = vector.load %arg17[%c0_65, %c0_66, %c0_67] : memref<2x1x32xf32, #tpu.memory_space<vmem>>, vector<1x1x32xf32>
    %160 = vector.shape_cast %159 : vector<1x1x32xf32> to vector<1x32xf32>
    %161 = vector.broadcast %160 : vector<1x32xf32> to vector<7x32xf32>
    %162 = arith.addf %158, %161 : vector<7x32xf32>
    %c1 = arith.constant 1 : index
    %c0_68 = arith.constant 0 : index
    %c0_69 = arith.constant 0 : index
    %163 = vector.load %arg10[%c1, %c0_68, %c0_69] : memref<2x1x32xf32, #tpu.memory_space<vmem>>, vector<1x1x32xf32>
    %164 = vector.shape_cast %163 : vector<1x1x32xf32> to vector<1x32xf32>
    %c1_70 = arith.constant 1 : index
    %c0_71 = arith.constant 0 : index
    %c0_72 = arith.constant 0 : index
    %165 = vector.load %arg11[%c1_70, %c0_71, %c0_72] : memref<2x1x32xf32, #tpu.memory_space<vmem>>, vector<1x1x32xf32>
    %166 = vector.shape_cast %165 : vector<1x1x32xf32> to vector<1x32xf32>
    %cst_73 = arith.constant dense<0.000000e+00> : vector<7xf32>
    %167 = vector.multi_reduction <add>, %162, %cst_73 [1] : vector<7x32xf32> to vector<7xf32>
    %168 = vector.shape_cast %167 : vector<7xf32> to vector<7x1xf32>
    %cst_74 = arith.constant 3.200000e+01 : f32
    %169 = vector.broadcast %cst_74 : f32 to vector<7x1xf32>
    %170 = arith.divf %168, %169 : vector<7x1xf32>
    %171 = vector.broadcast %170 : vector<7x1xf32> to vector<7x32xf32>
    %172 = arith.subf %162, %171 : vector<7x32xf32>
    %173 = arith.mulf %172, %172 : vector<7x32xf32>
    %cst_75 = arith.constant dense<0.000000e+00> : vector<7xf32>
    %174 = vector.multi_reduction <add>, %173, %cst_75 [1] : vector<7x32xf32> to vector<7xf32>
    %175 = vector.shape_cast %174 : vector<7xf32> to vector<7x1xf32>
    %cst_76 = arith.constant 3.200000e+01 : f32
    %176 = vector.broadcast %cst_76 : f32 to vector<7x1xf32>
    %177 = arith.divf %175, %176 : vector<7x1xf32>
    %cst_77 = arith.constant 9.99999974E-6 : f32
    %178 = vector.broadcast %cst_77 : f32 to vector<7x1xf32>
    %179 = arith.addf %177, %178 : vector<7x1xf32>
    %180 = math.rsqrt %179 : vector<7x1xf32>
    %181 = vector.broadcast %180 : vector<7x1xf32> to vector<7x32xf32>
    %182 = arith.mulf %172, %181 : vector<7x32xf32>
    %183 = vector.broadcast %164 : vector<1x32xf32> to vector<7x32xf32>
    %184 = arith.mulf %182, %183 : vector<7x32xf32>
    %185 = vector.broadcast %166 : vector<1x32xf32> to vector<7x32xf32>
    %186 = arith.addf %184, %185 : vector<7x32xf32>
    %c1_78 = arith.constant 1 : index
    %c0_79 = arith.constant 0 : index
    %c0_80 = arith.constant 0 : index
    %187 = vector.load %arg6[%c1_78, %c0_79, %c0_80] : memref<2x32x96xf32, #tpu.memory_space<vmem>>, vector<1x32x96xf32>
    %188 = vector.shape_cast %187 : vector<1x32x96xf32> to vector<32x96xf32>
    %cst_81 = arith.constant dense<0.000000e+00> : vector<7x96xf32>
    %189 = tpu.matmul %186, %188, %cst_81 {dimension_numbers = #tpu.dot_dimension_numbers<[1], [0], [0], [1], [0, 0, 1, 1], [], []>} : vector<7x32xf32>, vector<32x96xf32>, vector<7x96xf32> -> vector<7x96xf32>
    %c1_82 = arith.constant 1 : index
    %c0_83 = arith.constant 0 : index
    %c0_84 = arith.constant 0 : index
    %190 = vector.load %arg7[%c1_82, %c0_83, %c0_84] : memref<2x1x96xf32, #tpu.memory_space<vmem>>, vector<1x1x96xf32>
    %191 = vector.shape_cast %190 : vector<1x1x96xf32> to vector<1x96xf32>
    %192 = vector.broadcast %191 : vector<1x96xf32> to vector<7x96xf32>
    %193 = arith.addf %189, %192 : vector<7x96xf32>
    %194 = vector.extract_strided_slice %193 {offsets = [0, 0], sizes = [7, 8], strides = [1, 1]} : vector<7x96xf32> to vector<7x8xf32>
    %195 = vector.extract_strided_slice %193 {offsets = [0, 8], sizes = [7, 8], strides = [1, 1]} : vector<7x96xf32> to vector<7x8xf32>
    %196 = vector.extract_strided_slice %193 {offsets = [0, 16], sizes = [7, 8], strides = [1, 1]} : vector<7x96xf32> to vector<7x8xf32>
    %197 = vector.extract_strided_slice %193 {offsets = [0, 24], sizes = [7, 8], strides = [1, 1]} : vector<7x96xf32> to vector<7x8xf32>
    %198 = vector.shape_cast %194 : vector<7x8xf32> to vector<1x7x8xf32>
    %199 = vector.shape_cast %195 : vector<7x8xf32> to vector<1x7x8xf32>
    %200 = vector.shape_cast %196 : vector<7x8xf32> to vector<1x7x8xf32>
    %201 = vector.shape_cast %197 : vector<7x8xf32> to vector<1x7x8xf32>
    %202 = tpu.concatenate %198, %199, %200, %201 in 0 : vector<1x7x8xf32>, vector<1x7x8xf32>, vector<1x7x8xf32>, vector<1x7x8xf32> -> vector<4x7x8xf32>
    %203 = vector.extract_strided_slice %193 {offsets = [0, 32], sizes = [7, 8], strides = [1, 1]} : vector<7x96xf32> to vector<7x8xf32>
    %204 = vector.extract_strided_slice %193 {offsets = [0, 40], sizes = [7, 8], strides = [1, 1]} : vector<7x96xf32> to vector<7x8xf32>
    %205 = vector.extract_strided_slice %193 {offsets = [0, 48], sizes = [7, 8], strides = [1, 1]} : vector<7x96xf32> to vector<7x8xf32>
    %206 = vector.extract_strided_slice %193 {offsets = [0, 56], sizes = [7, 8], strides = [1, 1]} : vector<7x96xf32> to vector<7x8xf32>
    %207 = vector.shape_cast %203 : vector<7x8xf32> to vector<1x7x8xf32>
    %208 = vector.shape_cast %204 : vector<7x8xf32> to vector<1x7x8xf32>
    %209 = vector.shape_cast %205 : vector<7x8xf32> to vector<1x7x8xf32>
    %210 = vector.shape_cast %206 : vector<7x8xf32> to vector<1x7x8xf32>
    %211 = tpu.concatenate %207, %208, %209, %210 in 0 : vector<1x7x8xf32>, vector<1x7x8xf32>, vector<1x7x8xf32>, vector<1x7x8xf32> -> vector<4x7x8xf32>
    %212 = vector.extract_strided_slice %193 {offsets = [0, 64], sizes = [7, 8], strides = [1, 1]} : vector<7x96xf32> to vector<7x8xf32>
    %213 = vector.extract_strided_slice %193 {offsets = [0, 72], sizes = [7, 8], strides = [1, 1]} : vector<7x96xf32> to vector<7x8xf32>
    %214 = vector.extract_strided_slice %193 {offsets = [0, 80], sizes = [7, 8], strides = [1, 1]} : vector<7x96xf32> to vector<7x8xf32>
    %215 = vector.extract_strided_slice %193 {offsets = [0, 88], sizes = [7, 8], strides = [1, 1]} : vector<7x96xf32> to vector<7x8xf32>
    %216 = vector.shape_cast %212 : vector<7x8xf32> to vector<1x7x8xf32>
    %217 = vector.shape_cast %213 : vector<7x8xf32> to vector<1x7x8xf32>
    %218 = vector.shape_cast %214 : vector<7x8xf32> to vector<1x7x8xf32>
    %219 = vector.shape_cast %215 : vector<7x8xf32> to vector<1x7x8xf32>
    %220 = tpu.concatenate %216, %217, %218, %219 in 0 : vector<1x7x8xf32>, vector<1x7x8xf32>, vector<1x7x8xf32>, vector<1x7x8xf32> -> vector<4x7x8xf32>
    "tpu.trace_start"() <{level = 10 : i32, message = "hqd,hkd->hqk"}> : () -> ()
    %cst_85 = arith.constant dense<0.000000e+00> : vector<4x7x7xf32>
    %221 = tpu.matmul %202, %211, %cst_85 {dimension_numbers = #tpu.dot_dimension_numbers<[2], [2], [1], [1], [0, 0, 0, 1, 1, 1], [0], [0]>} : vector<4x7x8xf32>, vector<4x7x8xf32>, vector<4x7x7xf32> -> vector<4x7x7xf32>
    "tpu.trace_stop"() : () -> ()
    %cst_86 = arith.constant 0.353553385 : f32
    %222 = vector.broadcast %cst_86 : f32 to vector<4x7x7xf32>
    %223 = arith.mulf %221, %222 : vector<4x7x7xf32>
    %224 = vector.shape_cast %22 : vector<1x7xf32> to vector<1x1x7xf32>
    %225 = vector.broadcast %224 : vector<1x1x7xf32> to vector<4x7x7xf32>
    %226 = arith.addf %223, %225 : vector<4x7x7xf32>
    %cst_87 = arith.constant dense<0xFF800000> : vector<4x7xf32>
    %227 = vector.multi_reduction <maximumf>, %226, %cst_87 [2] : vector<4x7x7xf32> to vector<4x7xf32>
    %228 = vector.shape_cast %227 : vector<4x7xf32> to vector<4x7x1xf32>
    %229 = vector.broadcast %228 : vector<4x7x1xf32> to vector<4x7x7xf32>
    %230 = arith.subf %226, %229 : vector<4x7x7xf32>
    %231 = math.exp %230 : vector<4x7x7xf32>
    %232 = vector.shape_cast %24 : vector<1x7xf32> to vector<1x1x7xf32>
    %233 = vector.broadcast %232 : vector<1x1x7xf32> to vector<4x7x7xf32>
    %234 = arith.mulf %231, %233 : vector<4x7x7xf32>
    %cst_88 = arith.constant dense<0.000000e+00> : vector<4x7xf32>
    %235 = vector.multi_reduction <add>, %234, %cst_88 [2] : vector<4x7x7xf32> to vector<4x7xf32>
    %236 = vector.shape_cast %235 : vector<4x7xf32> to vector<4x7x1xf32>
    %cst_89 = arith.constant 1.000000e-30 : f32
    %237 = vector.broadcast %cst_89 : f32 to vector<4x7x1xf32>
    %238 = arith.maximumf %236, %237 : vector<4x7x1xf32>
    %239 = tpu.reciprocal %238 {approx = true} : vector<4x7x1xf32> -> vector<4x7x1xf32>
    %240 = vector.broadcast %239 : vector<4x7x1xf32> to vector<4x7x7xf32>
    %241 = arith.mulf %234, %240 : vector<4x7x7xf32>
    "tpu.trace_start"() <{level = 10 : i32, message = "hqk,hkd->hqd"}> : () -> ()
    %cst_90 = arith.constant dense<0.000000e+00> : vector<4x7x8xf32>
    %242 = tpu.matmul %241, %220, %cst_90 {dimension_numbers = #tpu.dot_dimension_numbers<[2], [1], [1], [2], [0, 0, 0, 1, 1, 2], [0], [0]>} : vector<4x7x7xf32>, vector<4x7x8xf32>, vector<4x7x8xf32> -> vector<4x7x8xf32>
    "tpu.trace_stop"() : () -> ()
    %243 = vector.extract_strided_slice %242 {offsets = [0, 0, 0], sizes = [1, 7, 8], strides = [1, 1, 1]} : vector<4x7x8xf32> to vector<1x7x8xf32>
    %244 = vector.shape_cast %243 : vector<1x7x8xf32> to vector<7x8xf32>
    %245 = vector.extract_strided_slice %242 {offsets = [1, 0, 0], sizes = [1, 7, 8], strides = [1, 1, 1]} : vector<4x7x8xf32> to vector<1x7x8xf32>
    %246 = vector.shape_cast %245 : vector<1x7x8xf32> to vector<7x8xf32>
    %247 = vector.extract_strided_slice %242 {offsets = [2, 0, 0], sizes = [1, 7, 8], strides = [1, 1, 1]} : vector<4x7x8xf32> to vector<1x7x8xf32>
    %248 = vector.shape_cast %247 : vector<1x7x8xf32> to vector<7x8xf32>
    %249 = vector.extract_strided_slice %242 {offsets = [3, 0, 0], sizes = [1, 7, 8], strides = [1, 1, 1]} : vector<4x7x8xf32> to vector<1x7x8xf32>
    %250 = vector.shape_cast %249 : vector<1x7x8xf32> to vector<7x8xf32>
    %251 = tpu.concatenate %244, %246, %248, %250 in 1 : vector<7x8xf32>, vector<7x8xf32>, vector<7x8xf32>, vector<7x8xf32> -> vector<7x32xf32>
    %c1_91 = arith.constant 1 : index
    %c0_92 = arith.constant 0 : index
    %c0_93 = arith.constant 0 : index
    %252 = vector.load %arg8[%c1_91, %c0_92, %c0_93] : memref<2x32x32xf32, #tpu.memory_space<vmem>>, vector<1x32x32xf32>
    %253 = vector.shape_cast %252 : vector<1x32x32xf32> to vector<32x32xf32>
    %cst_94 = arith.constant dense<0.000000e+00> : vector<7x32xf32>
    %254 = tpu.matmul %251, %253, %cst_94 {dimension_numbers = #tpu.dot_dimension_numbers<[1], [0], [0], [1], [0, 0, 1, 1], [], []>} : vector<7x32xf32>, vector<32x32xf32>, vector<7x32xf32> -> vector<7x32xf32>
    %255 = arith.addf %162, %254 : vector<7x32xf32>
    %c1_95 = arith.constant 1 : index
    %c0_96 = arith.constant 0 : index
    %c0_97 = arith.constant 0 : index
    %256 = vector.load %arg9[%c1_95, %c0_96, %c0_97] : memref<2x1x32xf32, #tpu.memory_space<vmem>>, vector<1x1x32xf32>
    %257 = vector.shape_cast %256 : vector<1x1x32xf32> to vector<1x32xf32>
    %258 = vector.broadcast %257 : vector<1x32xf32> to vector<7x32xf32>
    %259 = arith.addf %255, %258 : vector<7x32xf32>
    %c1_98 = arith.constant 1 : index
    %c0_99 = arith.constant 0 : index
    %c0_100 = arith.constant 0 : index
    %260 = vector.load %arg12[%c1_98, %c0_99, %c0_100] : memref<2x1x32xf32, #tpu.memory_space<vmem>>, vector<1x1x32xf32>
    %261 = vector.shape_cast %260 : vector<1x1x32xf32> to vector<1x32xf32>
    %c1_101 = arith.constant 1 : index
    %c0_102 = arith.constant 0 : index
    %c0_103 = arith.constant 0 : index
    %262 = vector.load %arg13[%c1_101, %c0_102, %c0_103] : memref<2x1x32xf32, #tpu.memory_space<vmem>>, vector<1x1x32xf32>
    %263 = vector.shape_cast %262 : vector<1x1x32xf32> to vector<1x32xf32>
    %cst_104 = arith.constant dense<0.000000e+00> : vector<7xf32>
    %264 = vector.multi_reduction <add>, %259, %cst_104 [1] : vector<7x32xf32> to vector<7xf32>
    %265 = vector.shape_cast %264 : vector<7xf32> to vector<7x1xf32>
    %cst_105 = arith.constant 3.200000e+01 : f32
    %266 = vector.broadcast %cst_105 : f32 to vector<7x1xf32>
    %267 = arith.divf %265, %266 : vector<7x1xf32>
    %268 = vector.broadcast %267 : vector<7x1xf32> to vector<7x32xf32>
    %269 = arith.subf %259, %268 : vector<7x32xf32>
    %270 = arith.mulf %269, %269 : vector<7x32xf32>
    %cst_106 = arith.constant dense<0.000000e+00> : vector<7xf32>
    %271 = vector.multi_reduction <add>, %270, %cst_106 [1] : vector<7x32xf32> to vector<7xf32>
    %272 = vector.shape_cast %271 : vector<7xf32> to vector<7x1xf32>
    %cst_107 = arith.constant 3.200000e+01 : f32
    %273 = vector.broadcast %cst_107 : f32 to vector<7x1xf32>
    %274 = arith.divf %272, %273 : vector<7x1xf32>
    %cst_108 = arith.constant 9.99999974E-6 : f32
    %275 = vector.broadcast %cst_108 : f32 to vector<7x1xf32>
    %276 = arith.addf %274, %275 : vector<7x1xf32>
    %277 = math.rsqrt %276 : vector<7x1xf32>
    %278 = vector.broadcast %277 : vector<7x1xf32> to vector<7x32xf32>
    %279 = arith.mulf %269, %278 : vector<7x32xf32>
    %280 = vector.broadcast %261 : vector<1x32xf32> to vector<7x32xf32>
    %281 = arith.mulf %279, %280 : vector<7x32xf32>
    %282 = vector.broadcast %263 : vector<1x32xf32> to vector<7x32xf32>
    %283 = arith.addf %281, %282 : vector<7x32xf32>
    %c1_109 = arith.constant 1 : index
    %c0_110 = arith.constant 0 : index
    %c0_111 = arith.constant 0 : index
    %284 = vector.load %arg14[%c1_109, %c0_110, %c0_111] : memref<2x32x64xf32, #tpu.memory_space<vmem>>, vector<1x32x64xf32>
    %285 = vector.shape_cast %284 : vector<1x32x64xf32> to vector<32x64xf32>
    %cst_112 = arith.constant dense<0.000000e+00> : vector<7x64xf32>
    %286 = tpu.matmul %283, %285, %cst_112 {dimension_numbers = #tpu.dot_dimension_numbers<[1], [0], [0], [1], [0, 0, 1, 1], [], []>} : vector<7x32xf32>, vector<32x64xf32>, vector<7x64xf32> -> vector<7x64xf32>
    %c1_113 = arith.constant 1 : index
    %c0_114 = arith.constant 0 : index
    %c0_115 = arith.constant 0 : index
    %287 = vector.load %arg15[%c1_113, %c0_114, %c0_115] : memref<2x1x64xf32, #tpu.memory_space<vmem>>, vector<1x1x64xf32>
    %288 = vector.shape_cast %287 : vector<1x1x64xf32> to vector<1x64xf32>
    %289 = vector.broadcast %288 : vector<1x64xf32> to vector<7x64xf32>
    %290 = arith.addf %286, %289 : vector<7x64xf32>
    %cst_116 = arith.constant 0.000000e+00 : f32
    %291 = vector.broadcast %cst_116 : f32 to vector<7x64xf32>
    %292 = arith.maximumf %290, %291 : vector<7x64xf32>
    %c1_117 = arith.constant 1 : index
    %c0_118 = arith.constant 0 : index
    %c0_119 = arith.constant 0 : index
    %293 = vector.load %arg16[%c1_117, %c0_118, %c0_119] : memref<2x64x32xf32, #tpu.memory_space<vmem>>, vector<1x64x32xf32>
    %294 = vector.shape_cast %293 : vector<1x64x32xf32> to vector<64x32xf32>
    %cst_120 = arith.constant dense<0.000000e+00> : vector<7x32xf32>
    %295 = tpu.matmul %292, %294, %cst_120 {dimension_numbers = #tpu.dot_dimension_numbers<[1], [0], [0], [1], [0, 0, 1, 1], [], []>} : vector<7x64xf32>, vector<64x32xf32>, vector<7x32xf32> -> vector<7x32xf32>
    %296 = arith.addf %259, %295 : vector<7x32xf32>
    %c1_121 = arith.constant 1 : index
    %c0_122 = arith.constant 0 : index
    %c0_123 = arith.constant 0 : index
    %297 = vector.load %arg17[%c1_121, %c0_122, %c0_123] : memref<2x1x32xf32, #tpu.memory_space<vmem>>, vector<1x1x32xf32>
    %298 = vector.shape_cast %297 : vector<1x1x32xf32> to vector<1x32xf32>
    %299 = vector.broadcast %298 : vector<1x32xf32> to vector<7x32xf32>
    %300 = arith.addf %296, %299 : vector<7x32xf32>
    %c0_124 = arith.constant 0 : index
    %c0_125 = arith.constant 0 : index
    %301 = vector.load %arg18[%c0_124, %c0_125] : memref<1x32xf32, #tpu.memory_space<vmem>>, vector<1x32xf32>
    %c0_126 = arith.constant 0 : index
    %c0_127 = arith.constant 0 : index
    %302 = vector.load %arg19[%c0_126, %c0_127] : memref<1x32xf32, #tpu.memory_space<vmem>>, vector<1x32xf32>
    %cst_128 = arith.constant dense<0.000000e+00> : vector<7xf32>
    %303 = vector.multi_reduction <add>, %300, %cst_128 [1] : vector<7x32xf32> to vector<7xf32>
    %304 = vector.shape_cast %303 : vector<7xf32> to vector<7x1xf32>
    %cst_129 = arith.constant 3.200000e+01 : f32
    %305 = vector.broadcast %cst_129 : f32 to vector<7x1xf32>
    %306 = arith.divf %304, %305 : vector<7x1xf32>
    %307 = vector.broadcast %306 : vector<7x1xf32> to vector<7x32xf32>
    %308 = arith.subf %300, %307 : vector<7x32xf32>
    %309 = arith.mulf %308, %308 : vector<7x32xf32>
    %cst_130 = arith.constant dense<0.000000e+00> : vector<7xf32>
    %310 = vector.multi_reduction <add>, %309, %cst_130 [1] : vector<7x32xf32> to vector<7xf32>
    %311 = vector.shape_cast %310 : vector<7xf32> to vector<7x1xf32>
    %cst_131 = arith.constant 3.200000e+01 : f32
    %312 = vector.broadcast %cst_131 : f32 to vector<7x1xf32>
    %313 = arith.divf %311, %312 : vector<7x1xf32>
    %cst_132 = arith.constant 9.99999974E-6 : f32
    %314 = vector.broadcast %cst_132 : f32 to vector<7x1xf32>
    %315 = arith.addf %313, %314 : vector<7x1xf32>
    %316 = math.rsqrt %315 : vector<7x1xf32>
    %317 = vector.broadcast %316 : vector<7x1xf32> to vector<7x32xf32>
    %318 = arith.mulf %308, %317 : vector<7x32xf32>
    %319 = vector.broadcast %301 : vector<1x32xf32> to vector<7x32xf32>
    %320 = arith.mulf %318, %319 : vector<7x32xf32>
    %321 = vector.broadcast %302 : vector<1x32xf32> to vector<7x32xf32>
    %322 = arith.addf %320, %321 : vector<7x32xf32>
    %c0_133 = arith.constant 0 : index
    %c0_134 = arith.constant 0 : index
    %c0_135 = arith.constant 0 : index
    %323 = vector.load %arg20[%c0_133, %c0_134, %c0_135] : memref<1x7x32xf32, #tpu.memory_space<vmem>>, vector<1x7x32xf32>
    %324 = vector.shape_cast %323 : vector<1x7x32xf32> to vector<7x32xf32>
    %325 = vector.shape_cast %322 : vector<7x32xf32> to vector<1x7x32xf32>
    tpu.vector_store %arg20[%c0_133, %c0_134, %c0_135], %325 {strides = array<i32>} : memref<1x7x32xf32, #tpu.memory_space<vmem>>, vector<1x7x32xf32>,
    return
  }
  func.func @transform_0(%arg0: i32, %arg1: memref<2xi32, #tpu.memory_space<smem>>) -> (i32, i32, i32) {
    %c0_i32 = arith.constant 0 : i32
    %c0_i32_0 = arith.constant 0 : i32
    %c0_i32_1 = arith.constant 0 : i32
    return %arg0, %c0_i32, %c0_i32_0 : i32, i32, i32
  }
  func.func @transform_1(%arg0: i32, %arg1: memref<2xi32, #tpu.memory_space<smem>>) -> (i32, i32) {
    %c0_i32 = arith.constant 0 : i32
    %c0_i32_0 = arith.constant 0 : i32
    %c0_i32_1 = arith.constant 0 : i32
    return %c0_i32, %c0_i32_0 : i32, i32
  }
  func.func @transform_2(%arg0: i32, %arg1: memref<2xi32, #tpu.memory_space<smem>>) -> (i32, i32) {
    %c0_i32 = arith.constant 0 : i32
    %c0_i32_0 = arith.constant 0 : i32
    %c0_i32_1 = arith.constant 0 : i32
    return %c0_i32, %c0_i32_0 : i32, i32
  }
  func.func @transform_3(%arg0: i32, %arg1: memref<2xi32, #tpu.memory_space<smem>>) -> (i32, i32) {
    %c0_i32 = arith.constant 0 : i32
    %c0_i32_0 = arith.constant 0 : i32
    %c0_i32_1 = arith.constant 0 : i32
    return %c0_i32, %c0_i32_0 : i32, i32
  }
  func.func @transform_4(%arg0: i32, %arg1: memref<2xi32, #tpu.memory_space<smem>>) -> (i32, i32, i32) {
    %c0_i32 = arith.constant 0 : i32
    %c0_i32_0 = arith.constant 0 : i32
    %c0_i32_1 = arith.constant 0 : i32
    %c0_i32_2 = arith.constant 0 : i32
    return %c0_i32, %c0_i32_0, %c0_i32_1 : i32, i32, i32
  }
  func.func @transform_5(%arg0: i32, %arg1: memref<2xi32, #tpu.memory_space<smem>>) -> (i32, i32, i32) {
    %c0_i32 = arith.constant 0 : i32
    %c0_i32_0 = arith.constant 0 : i32
    %c0_i32_1 = arith.constant 0 : i32
    %c0_i32_2 = arith.constant 0 : i32
    return %c0_i32, %c0_i32_0, %c0_i32_1 : i32, i32, i32
  }
  func.func @transform_6(%arg0: i32, %arg1: memref<2xi32, #tpu.memory_space<smem>>) -> (i32, i32, i32) {
    %c0_i32 = arith.constant 0 : i32
    %c0_i32_0 = arith.constant 0 : i32
    %c0_i32_1 = arith.constant 0 : i32
    %c0_i32_2 = arith.constant 0 : i32
    return %c0_i32, %c0_i32_0, %c0_i32_1 : i32, i32, i32
  }
  func.func @transform_7(%arg0: i32, %arg1: memref<2xi32, #tpu.memory_space<smem>>) -> (i32, i32, i32) {
    %c0_i32 = arith.constant 0 : i32
    %c0_i32_0 = arith.constant 0 : i32
    %c0_i32_1 = arith.constant 0 : i32
    %c0_i32_2 = arith.constant 0 : i32
    return %c0_i32, %c0_i32_0, %c0_i32_1 : i32, i32, i32
  }
  func.func @transform_8(%arg0: i32, %arg1: memref<2xi32, #tpu.memory_space<smem>>) -> (i32, i32, i32) {
    %c0_i32 = arith.constant 0 : i32
    %c0_i32_0 = arith.constant 0 : i32
    %c0_i32_1 = arith.constant 0 : i32
    %c0_i32_2 = arith.constant 0 : i32
    return %c0_i32, %c0_i32_0, %c0_i32_1 : i32, i32, i32
  }
  func.func @transform_9(%arg0: i32, %arg1: memref<2xi32, #tpu.memory_space<smem>>) -> (i32, i32, i32) {
    %c0_i32 = arith.constant 0 : i32
    %c0_i32_0 = arith.constant 0 : i32
    %c0_i32_1 = arith.constant 0 : i32
    %c0_i32_2 = arith.constant 0 : i32
    return %c0_i32, %c0_i32_0, %c0_i32_1 : i32, i32, i32
  }
  func.func @transform_10(%arg0: i32, %arg1: memref<2xi32, #tpu.memory_space<smem>>) -> (i32, i32, i32) {
    %c0_i32 = arith.constant 0 : i32
    %c0_i32_0 = arith.constant 0 : i32
    %c0_i32_1 = arith.constant 0 : i32
    %c0_i32_2 = arith.constant 0 : i32
    return %c0_i32, %c0_i32_0, %c0_i32_1 : i32, i32, i32
  }
  func.func @transform_11(%arg0: i32, %arg1: memref<2xi32, #tpu.memory_space<smem>>) -> (i32, i32, i32) {
    %c0_i32 = arith.constant 0 : i32
    %c0_i32_0 = arith.constant 0 : i32
    %c0_i32_1 = arith.constant 0 : i32
    %c0_i32_2 = arith.constant 0 : i32
    return %c0_i32, %c0_i32_0, %c0_i32_1 : i32, i32, i32
  }
  func.func @transform_12(%arg0: i32, %arg1: memref<2xi32, #tpu.memory_space<smem>>) -> (i32, i32, i32) {
    %c0_i32 = arith.constant 0 : i32
    %c0_i32_0 = arith.constant 0 : i32
    %c0_i32_1 = arith.constant 0 : i32
    %c0_i32_2 = arith.constant 0 : i32
    return %c0_i32, %c0_i32_0, %c0_i32_1 : i32, i32, i32
  }
  func.func @transform_13(%arg0: i32, %arg1: memref<2xi32, #tpu.memory_space<smem>>) -> (i32, i32, i32) {
    %c0_i32 = arith.constant 0 : i32
    %c0_i32_0 = arith.constant 0 : i32
    %c0_i32_1 = arith.constant 0 : i32
    %c0_i32_2 = arith.constant 0 : i32
    return %c0_i32, %c0_i32_0, %c0_i32_1 : i32, i32, i32
  }
  func.func @transform_14(%arg0: i32, %arg1: memref<2xi32, #tpu.memory_space<smem>>) -> (i32, i32, i32) {
    %c0_i32 = arith.constant 0 : i32
    %c0_i32_0 = arith.constant 0 : i32
    %c0_i32_1 = arith.constant 0 : i32
    %c0_i32_2 = arith.constant 0 : i32
    return %c0_i32, %c0_i32_0, %c0_i32_1 : i32, i32, i32
  }
  func.func @transform_15(%arg0: i32, %arg1: memref<2xi32, #tpu.memory_space<smem>>) -> (i32, i32, i32) {
    %c0_i32 = arith.constant 0 : i32
    %c0_i32_0 = arith.constant 0 : i32
    %c0_i32_1 = arith.constant 0 : i32
    %c0_i32_2 = arith.constant 0 : i32
    return %c0_i32, %c0_i32_0, %c0_i32_1 : i32, i32, i32
  }
  func.func @transform_16(%arg0: i32, %arg1: memref<2xi32, #tpu.memory_space<smem>>) -> (i32, i32) {
    %c0_i32 = arith.constant 0 : i32
    %c0_i32_0 = arith.constant 0 : i32
    %c0_i32_1 = arith.constant 0 : i32
    return %c0_i32, %c0_i32_0 : i32, i32
  }
  func.func @transform_17(%arg0: i32, %arg1: memref<2xi32, #tpu.memory_space<smem>>) -> (i32, i32) {
    %c0_i32 = arith.constant 0 : i32
    %c0_i32_0 = arith.constant 0 : i32
    %c0_i32_1 = arith.constant 0 : i32
    return %c0_i32, %c0_i32_0 : i32, i32
  }
  func.func @transform_18(%arg0: i32, %arg1: memref<2xi32, #tpu.memory_space<smem>>) -> (i32, i32, i32) {
    %c0_i32 = arith.constant 0 : i32
    %c0_i32_0 = arith.constant 0 : i32
    %c0_i32_1 = arith.constant 0 : i32
    return %arg0, %c0_i32, %c0_i32_0 : i32, i32, i32
  }
}

</mosaic_0001>

<bundles_post_ra>
// kernel: bnf_forward.1
= control target key start
LH: loop header
LB: loop body
LE: loop exit
PB: predicated region body
PF: predicated region fallthrough
CT: control target
= control target key end

     0   :  { %s4180_s0 = inlined_call_operand.vmem [shape: s32[2], index: 0, kind: input, shape index: {}]   ;;  %s4181_s1 = inlined_call_operand.vmem [shape: f32[2,7,96], index: 1, kind: input, shape index: {}]   ;;  %s4182_s2 = inlined_call_operand.vmem [shape: f32[96,32], index: 2, kind: input, shape index: {}]   ;;  %s4183_s3 = inlined_call_operand.vmem [shape: f32[1,32], index: 3, kind: input, shape index: {}]   ;;  %s4184_s4 = inlined_call_operand.vmem [shape: f32[7,32], index: 4, kind: input, shape index: {}]   ;;  %s4185_s5 = inlined_call_operand.vmem [shape: f32[2,32,96], index: 5, kind: input, shape index: {}]   ;;  %s4186_s6 = inlined_call_operand.vmem [shape: f32[2,1,96], index: 6, kind: input, shape index: {}]   ;;  %s4187_s7 = inlined_call_operand.vmem [shape: f32[2,32,32], index: 7, kind: input, shape index: {}]   ;;  %s4188_s8 = inlined_call_operand.vmem [shape: f32[2,1,32], index: 8, kind: input, shape index: {}]   ;;  %s4189_s9 = inlined_call_operand.vmem [shape: f32[2,1,32], index: 9, kind: input, shape index: {}]   ;;  %s4190_s10 = inlined_call_operand.vmem [shape: f32[2,1,32], index: 10, kind: input, shape index: {}]   ;;  %s4191_s11 = inlined_call_operand.vmem [shape: f32[2,1,32], index: 11, kind: input, shape index: {}]   ;;  %s4192_s12 = inlined_call_operand.vmem [shape: f32[2,1,32], index: 12, kind: input, shape index: {}]   ;;  %s4193_s13 = inlined_call_operand.vmem [shape: f32[2,32,64], index: 13, kind: input, shape index: {}]   ;;  %s4194_s14 = inlined_call_operand.vmem [shape: f32[2,1,64], index: 14, kind: input, shape index: {}]   ;;  %s4195_s15 = inlined_call_operand.vmem [shape: f32[2,64,32], index: 15, kind: input, shape index: {}]   ;;  %s4196_s16 = inlined_call_operand.vmem [shape: f32[2,1,32], index: 16, kind: input, shape index: {}]   ;;  %s4197_s17 = inlined_call_operand.vmem [shape: f32[1,32], index: 17, kind: input, shape index: {}]   ;;  %s4198_s18 = inlined_call_operand.vmem [shape: f32[1,32], index: 18, kind: input, shape index: {}]   ;;  %s4199_s19 = inlined_call_operand.vmem [shape: f32[2,7,32], index: 19, kind: output, shape index: {}]  }
   0x1   :  { %4208 = sst [smem:[#allocation5_spill]] %s4180_s0 }
   0x2   :  { %4209 = sst [smem:[#allocation6_spill]] %s4181_s1  ;;  %s4213_s20 = sld [smem:[#allocation5_spill]] }
   0x3   :  { %4210 = sst [smem:[#allocation7_spill]] %s4182_s2 }
   0x4   :  { %4211 = sst [smem:[#allocation8_spill]] %s4183_s3 }
   0x5   :  { %4212 = sst [smem:[#allocation9_spill]] %s4192_s12 }
   0x8   :  { %s24_s12 = sshll.u32 %s4213_s20, 4  ;;  %s25_s12 = int_to_ptr.vmem [resolvable:$true] %s24_s12 }
   0x9   :  { %s3527_s21 = scalar_lea.vmem %s25_s12, 16  ;;  %p3532_p1 = scmp.lt.s32.totalorder %s25_s12, %s25_s12 }
   0xa   :  { %p3528_p0 = scmp.ne.s32.totalorder %s25_s12, %s3527_s21  ;;  %p3533_p2 = scmp.lt.s32.totalorder %s3527_s21, %s3527_s21 }
   0xc   :  { %p3534_p3 = por %p3533_p2, %p3532_p1 }
   0xe   :  { %p3535_p4 = pnand %p3534_p3, %p3528_p0 }
  0x10   :  { %3538 = shalt.err (!%p3535_p4)  }
  0x11   :  { %s3549_s1 = smov [#allocation3]  }
  0x12   :  { %27 = dma.vmem_to_smem %s25_s12, 16, %s3549_s1, [#allocation2] }
  0x13   :  { %3543 = dma.done.wait [#allocation2], 16 }
  0x14   :  { %3544 = vsyncadd [#allocation2], 4294967280 }
  0x15   :  { %29 = sfence }
  0x16   :  { %s3665_s22 = smov 0  }
  0x17 LB: > { %s3671_s2 = sadd.s32 4294967295, %s3547_s22   ;;  %p2988_p5 = scmp.ge.s32.totalorder %s3547_s22, 1  ;;  %s3547_s22 = sphi %s3665_s22, %s35_s22  }
  0x18   : > { %p518_p6 = scmp.lt.s32.totalorder %s3547_s22, 3 }
  0x1a   : > { %p519_p7 = pnand %p2988_p5, %p518_p6 }
  0x1b   : > { %s4214_s24 = sld [smem:[#allocation7_spill]] (!%p519_p7)  ;;  %v3550_v3 = vmov (!%p519_p7), 0.0|0.0   ;;  %vm3551_vm0 = vmmov (!%p519_p7), 0   ;;  %v3552_v6 = vmov (!%p519_p7), 0.0   ;;  %p570_p8 = scmp.lt.s32.totalorder (!%p519_p7), %s3671_s2, 1  ;;  %vm598_vm1 = vcmask (!%p519_p7), 785408  }
  0x1c   : > { %522 = sbr.rel (%p519_p7) target bundleno = 5769 (0x1689), region = 92  ;;  %3386 = vmatprep.subr.bf16.mxu0 (!%p519_p7), %v3550_v3  ;;  %3199 = vmatprep.mubr.msk.f32.mxu0 (!%p519_p7), %vm3551_vm0, %v3552_v6  ;;  %s4215_s25 = sld [smem:[#allocation6_spill]] (!%p519_p7)  ;;  %v673_v25 = vld [vmem:[%s4184_s4] sm:$0x7f] (!%p519_p7)  ;;  %vm687_vm2 = vcmask (!%p519_p7), 260096   ;;  %v717_v35 = vld [vmem:[%s4185_s5 + $0x8] sm:$0xff] (!%p519_p7)  ;;  %v675_v60 = vlaneseq (!%p519_p7) }
  0x1d   : > { %3404 = vmatprep.subr.bf16.mxu1 (!%p519_p7), %v3550_v3  ;;  %3210 = vmatprep.mubr.msk.f32.mxu1 (!%p519_p7), %vm3551_vm0, %v3552_v6  ;;  %s4216_s28 = sld [smem:[#allocation8_spill]] (!%p519_p7)  ;;  %v716_v34 = vld [vmem:[%s4185_s5] sm:$0xff] (!%p519_p7)  ;;  %v718_v36 = vld [vmem:[%s4185_s5 + $0x10] sm:$0xff] (!%p519_p7)  ;;  %v719_v38 = vld [vmem:[%s4185_s5 + $0x18] sm:$0xff] (!%p519_p7)  ;;  %vm727_vm3 = vcmask (!%p519_p7), 261120   ;;  %s3553_s23 = smov (!%p519_p7), 104  }
  0x1e   : > { %v3405_v37 = vpack.c.bf16 (!%p519_p7), %v717_v35, %v716_v34  ;;  %v3408_v39 = vpack.c.bf16 (!%p519_p7), %v719_v38, %v718_v36  ;;  %v2994_v44 = vld [vmem:[%s4189_s9] ss:$0 sm:$0xff] (!%p519_p7)  ;;  %s3556_s26 = smov (!%p519_p7), 96   ;;  %vm810_vm4 = vcmask (!%p519_p7), 64512   ;;  %v676_v61 = vand.u32 (!%p519_p7), 127, %v675_v60  ;;  %s679_s27 = sld [smem:[#allocation3 + %s3671_s2]] (!%p519_p7) }
  0x1f   : > { %v2995_v46 = vld [vmem:[%s4190_s10] ss:$0 sm:$0xff] (!%p519_p7)  ;;  %vm1121_vm6 = vcmask (!%p519_p7), 55296   ;;  %vm1180_vm7 = vcmask (!%p519_p7), 1046528   ;;  %vm1176_vm8 = vcmask (!%p519_p7), 56320   ;;  %s4204_s0 = smov (!%p519_p7), 16  }
  0x20   : > { %3406 = vmatpush3.bf16.msra.mxu1 (!%p519_p7), %v3405_v37  ;;  %v2996_v49 = vld [vmem:[%s4186_s6] ss:$0 sm:$0xff] (!%p519_p7)  ;;  %v677_v62 = vmul.u32 (!%p519_p7), 4, %v676_v61  ;;  %s4203_s30 = smov (!%p519_p7), 24   ;;  %vm1497_vm9 = vcmask (!%p519_p7), 130048   ;;  %vm1499_vm10 = vcmask (!%p519_p7), 195584  }
  0x21   : > { %v579_v0 = vld [vmem:[%s4214_s24] sm:$0xff] (!%p519_p7)  ;;  %v580_v1 = vld [vmem:[%s4214_s24 + $0x8] sm:$0xff] (!%p519_p7)  ;;  %v581_v2 = vld [vmem:[%s4214_s24 + $0x10] sm:$0xff] (!%p519_p7)  ;;  %3407 = vmatprep.subr.bf16.mxu1 (!%p519_p7), %v3550_v3  ;;  %vm1709_vm11 = vcmask (!%p519_p7), 523264  }
  0x22   : > { %v3387_v4 = vpack.c.bf16 (!%p519_p7), %v580_v1, %v579_v0  ;;  %v582_v5 = vld [vmem:[%s4214_s24 + $0x18] sm:$0xff] (!%p519_p7)  ;;  %v583_v8 = vld [vmem:[%s4214_s24 + $0x20] sm:$0xff] (!%p519_p7)  ;;  %v584_v9 = vld [vmem:[%s4214_s24 + $0x28] sm:$0xff] (!%p519_p7)  ;;  %v678_v63 = vadd.s32 (!%p519_p7), 6, %v677_v62 }
  0x23   : > { %v3390_v7 = vpack.c.bf16 %v582_v5, %v581_v2  ;;  %v3393_v10 = vpack.c.bf16 %v584_v9, %v583_v8  ;;  %v585_v11 = vld [vmem:[%s4214_s24 + $0x30] sm:$0xff]  ;;  %v586_v12 = vld [vmem:[%s4214_s24 + $0x38] sm:$0xff]  ;;  %v587_v14 = vld [vmem:[%s4214_s24 + $0x40] sm:$0xff]  ;;  %s3716_s29 = scalar_select %p570_p8, %s3671_s2, 1 }
  0x24   : > { %3388 = vmatpush3.bf16.msra.mxu0 %v3387_v4  ;;  %v3396_v13 = vpack.c.bf16 %v586_v12, %v585_v11  ;;  %v588_v15 = vld [vmem:[%s4214_s24 + $0x48] sm:$0xff]  ;;  %v589_v17 = vld [vmem:[%s4214_s24 + $0x50] sm:$0xff]  ;;  %v590_v18 = vld [vmem:[%s4214_s24 + $0x58] sm:$0xff]  ;;  %3409 = vmatpush3.bf16.msra.mxu1 %v3408_v39  ;;  %v680_v0 = vstv %s679_s27  ;;  %v3557_v4 = vmov -1e+30   ;;  %s4206_s2 = smov 64  }
  0x25   : > { %3389 = vmatprep.subr.bf16.mxu0 %v3550_v3  ;;  %v3399_v16 = vpack.c.bf16 %v588_v15, %v587_v14  ;;  %s4202_s1 = sshll.u32 %s3716_s29, 3  ;;  %v3402_v19 = vpack.c.bf16 %v590_v18, %v589_v17  ;;  %v2991_v21 = vld [vmem:[%s4216_s28] ss:$0 sm:$0xff]  ;;  %3213 = vmatprep.subr.mxu1 %v3552_v6  ;;  %vm3820_vm5 = vcmp.lt.s32.totalorder %v678_v63, %v680_v0  ;;  %s4205_s28 = smov 8  }
  0x26   : > { %s573_s3 = scalar_lea.vmem %s4215_s25, %s4202_s1  ;;  %s3554_s25 = smov 120   ;;  %v3826_v5 = vsel %vm3820_vm5, 0.0, %v3557_v4 }
  0x27   : > { %v578_v20 = vld [vmem:[%s573_s3] sm:$0x7f]  ;;  %s3555_s3 = smov 112   ;;  %s4221_s27 = smov 8  }
  0x28   : > { %3391 = vmatpush3.bf16.msra.mxu0 %v3390_v7  ;;  %s4222_s1 = smov 16  }
  0x29   : > { %3392 = vmatprep.subr.bf16.mxu0 %v3550_v3 }
  0x2c   : > { %3394 = vmatpush3.bf16.msra.mxu0 %v3393_v10 }
  0x2d   : > { %3395 = vmatprep.subr.bf16.mxu0 %v3550_v3 }
  0x30   : > { %3397 = vmatpush3.bf16.msra.mxu0 %v3396_v13 }
  0x31   : > { %3398 = vmatprep.subr.bf16.mxu0 %v3550_v3 }
  0x34   : > { %3400 = vmatpush3.bf16.msra.mxu0 %v3399_v16 }
  0x35   : > { %3401 = vmatprep.subr.bf16.mxu0 %v3550_v3 }
  0x38   : > { %3403 = vmatpush3.bf16.msra.mxu0 %v3402_v19 }
  0x39   : > { %3233 = vmatprep.subr.mxu0 %v3552_v6 }
  0x3b   : > { %3200 = vmatmul.mubr.msk.f32.vlgmr.msra.gmra.mrb[0].mxu0 %vm598_vm1, %v578_v20 }
  0x3c   : > { %3235 = vmatprep.mubr.msk.f32.mxu0 %vm3551_vm0, %v3552_v6 }
 0x10e   : > { %v668_v22 = vpop.f32.mrb[0].mxu0 }
 0x10f   : > { %v669_v23 = vadd.f32 %v2991_v21, %v668_v22  ;;  %v3201_v24 = vpop.f32.mrb[1].mxu0 }
 0x111   : > { %v672_v26 = vmul.f32 5.656854, %v669_v23 }
 0x113   : > { %v3741_v27 = vadd.f32 %v673_v25, %v672_v26 }
 0x115   : > { %v688_v28 = vsel %vm687_vm2, %v3741_v27, 0.0 }
 0x116   : > { %689 = vadd.xlane.f32.xlu0 %v688_v28 }
 0x1a3   : > { %v690_v29 = vpop.xlane.xlu0 %689 }
 0x1a4   : > { %v692_v30 = vmul.f32 0.03125, %v690_v29 }
 0x1a6   : > { %v693_v31 = vsub.f32 %v3741_v27, %v692_v30 }
 0x1a8   : > { %v694_v32 = vmul.f32 %v693_v31, %v693_v31 }
 0x1aa   : > { %v695_v33 = vsel %vm687_vm2, %v694_v32, 0.0 }
 0x1ab   : > { %696 = vadd.xlane.f32.xlu0 %v695_v33 }
 0x238   : > { %v697_v40 = vpop.xlane.xlu0 %696 }
 0x239   : > { %v698_v41 = vmul.f32 0.03125, %v697_v40 }
 0x23b   : > { %v699_v42 = vadd.f32 1e-05, %v698_v41 }
 0x23d   : > { %3485 = vrsqrt.f32 %v699_v42 }
 0x247   : > { %v3486_v43 = vpop.eup %3485 }
 0x248   : > { %v701_v45 = vmul.f32 %v3486_v43, %v693_v31  ;;  %v3841_v31 = vsel %vm3820_vm5, 1.0, %v3552_v6 }
 0x24a   : > { %v708_v47 = vmul.f32 %v2994_v44, %v701_v45 }
 0x24c   : > { %v715_v48 = vadd.f32 %v2995_v46, %v708_v47 }
 0x24e   : > { %3211 = vmatmul.mubr.msk.f32.vlgmr.msra.gmra.mrb[0].mxu1 %vm727_vm3, %v715_v48 }
 0x24f   : > { %3215 = vmatprep.mubr.msk.f32.mxu1 %vm3551_vm0, %v3552_v6 }
 0x321   : > { %v797_v50 = vpop.f32.mrb[0].mxu1 }
 0x322   : > { %v3773_v51 = vadd.f32 %v2996_v49, %v797_v50  ;;  %v3212_v52 = vpop.f32.mrb[1].mxu1 }
 0x324   : > { %806 = vrot.lane.b32.xlu0 %v3773_v51, %s3553_s23  ;;  %802 = vrot.lane.b32.xlu1 %v3773_v51, %s3554_s25 }
 0x328   : > { %804 = vrot.lane.b32.xlu1 %v3773_v51, %s3555_s3 }
 0x32c   : > { %808 = vrot.lane.b32.xlu1 %v3773_v51, %s3556_s26 }
 0x396   : > { %v3783_v53 = vpop.permute.xlu1 %802  ;;  %v3791_v55 = vpop.permute.xlu0 %806 }
 0x397   : > { %885 = vrot.lane.b32.xlu1 %v3783_v53, %s3556_s26 }
 0x39a   : > { %v3787_v54 = vpop.permute.xlu1 %804 }
 0x39b   : > { %961 = vrot.lane.b32.xlu1 %v3787_v54, %s3556_s26 }
 0x39e   : > { %v809_v56 = vpop.permute.xlu1 %808 }
 0x39f   : > { %1037 = vrot.lane.b32.xlu1 %v3791_v55, %s3556_s26  ;;  %3214 = vmatpush3.xpose.msk.msra.mxu1 %vm810_vm4, %v809_v56 }
 0x3a0   : > { %3218 = vmatprep.subr.mxu1 %v3552_v6 }
 0x3a2   : > { %3216 = vmatmul.mubr.msk.f32.vlgmr.msra.gmra.mrb[2].mxu1 %vm810_vm4, %v3773_v51 }
 0x3a3   : > { %3220 = vmatprep.mubr.msk.f32.mxu1 %vm3551_vm0, %v3552_v6 }
 0x409   : > { %v886_v57 = vpop.permute.xlu1 %885 }
 0x40a   : > { %3219 = vmatpush3.xpose.msk.msra.mxu1 %vm810_vm4, %v886_v57 }
 0x40b   : > { %3223 = vmatprep.subr.mxu1 %v3552_v6 }
 0x40d   : > { %3221 = vmatmul.mubr.msk.f32.vlgmr.msra.gmra.mrb[4].mxu1 %vm810_vm4, %v3783_v53  ;;  %v962_v58 = vpop.permute.xlu1 %961 }
 0x40e   : > { %3224 = vmatpush3.xpose.msk.msra.mxu1 %vm810_vm4, %v962_v58  ;;  %3225 = vmatprep.mubr.msk.f32.mxu1 %vm3551_vm0, %v3552_v6 }
 0x40f   : > { %3228 = vmatprep.subr.mxu1 %v3552_v6 }
 0x411   : > { %3226 = vmatmul.mubr.msk.f32.vlgmr.msra.gmra.mrb[6].mxu1 %vm810_vm4, %v3787_v54  ;;  %v1038_v59 = vpop.permute.xlu1 %1037 }
 0x412   : > { %3229 = vmatpush3.xpose.msk.msra.mxu1 %vm810_vm4, %v1038_v59  ;;  %3230 = vmatprep.mubr.msk.f32.mxu1 %vm3551_vm0, %v3552_v6 }
 0x413   : > { %3238 = vmatprep.subr.mxu1 %v3552_v6 }
 0x415   : > { %3231 = vmatmul.mubr.msk.f32.vlgmr.msra.gmra.mrb[8].mxu1 %vm810_vm4, %v3791_v55 }
 0x416   : > { %3240 = vmatprep.mubr.msk.f32.mxu1 %vm3551_vm0, %v3552_v6 }
 0x475   : > { %v881_v2 = vpop.f32.mrb[2].mxu1 }
 0x476   : > { %v1113_v7 = vmul.f32 0.35355338, %v881_v2  ;;  %v3217_v8 = vpop.f32.mrb[3].mxu1 }
 0x478   : > { %v1117_v9 = vadd.f32 %v1113_v7, %v3826_v5 }
 0x47a   : > { %v1122_v10 = vsel %vm1121_vm6, %v1117_v9, -inf }
 0x47b   : > { %1123 = vmax.xlane.f32.xlu1 %v1122_v10 }
 0x4e0   : > { %v957_v11 = vpop.f32.mrb[4].mxu1 }
 0x4e1   : > { %v1114_v12 = vmul.f32 0.35355338, %v957_v11  ;;  %v3222_v13 = vpop.f32.mrb[5].mxu1 }
 0x4e2   : > { %v1501_v13 = vld [vmem:[%s4187_s7] sm:$0xff] }
 0x4e3   : > { %v1118_v14 = vadd.f32 %v1114_v12, %v3826_v5 }
 0x4e4   : > { %v1033_v15 = vpop.f32.mrb[6].mxu1 }
 0x4e5   : > { %v1115_v16 = vmul.f32 0.35355338, %v1033_v15  ;;  %v3227_v17 = vpop.f32.mrb[7].mxu1  ;;  %v1125_v18 = vsel %vm1121_vm6, %v1118_v14, -inf }
 0x4e6   : > { %1126 = vmax.xlane.f32.xlu0 %v1125_v18  ;;  %v1504_v17 = vld [vmem:[%s4187_s7 + $0x18] sm:$0xff] }
 0x4e7   : > { %v1119_v19 = vadd.f32 %v1115_v16, %v3826_v5  ;;  %v1503_v16 = vld [vmem:[%s4187_s7 + $0x10] sm:$0xff] }
 0x4e8   : > { %v1109_v20 = vpop.f32.mrb[8].mxu1  ;;  %v3414_v18 = vpack.c.bf16 %v1504_v17, %v1503_v16 }
 0x4e9   : > { %v1116_v21 = vmul.f32 0.35355338, %v1109_v20  ;;  %v3232_v22 = vpop.f32.mrb[9].mxu1  ;;  %v1128_v23 = vsel %vm1121_vm6, %v1119_v19, -inf }
 0x4ea   : > { %1129 = vmax.xlane.f32.xlu1 %v1128_v23 }
 0x4eb   : > { %v1120_v24 = vadd.f32 %v1116_v21, %v3826_v5 }
 0x4ed   : > { %v1131_v25 = vsel %vm1121_vm6, %v1120_v24, -inf }
 0x4ee   : > { %1132 = vmax.xlane.f32.xlu0 %v1131_v25 }
 0x4fb   : > { %1174 = vrot.lane.b32.xlu1 %v3773_v51, %s4206_s2 }
 0x508   : > { %v1124_v26 = vpop.xlane.xlu1 %1123 }
 0x509   : > { %v1134_v28 = vsub.f32 %v1117_v9, %v1124_v26 }
 0x50b   : > { %v1138_v29 = vmul.f32 1.442695, %v1134_v28 }
 0x50d   : > { %3487 = vpow2.f32 %v1138_v29 }
 0x517   : > { %v3488_v30 = vpop.eup %3487 }
 0x518   : > { %v1146_v32 = vmul.f32 %v3488_v30, %v3841_v31 }
 0x51a   : > { %v1150_v33 = vsel %vm1121_vm6, %v1146_v32, 0.0 }
 0x51f   : > { %1151 = vadd.xlane.f32.xlu1 %v1150_v33 }
 0x573   : > { %v1127_v34 = vpop.xlane.xlu0 %1126 }
 0x574   : > { %v1135_v35 = vsub.f32 %v1118_v14, %v1127_v34  ;;  %v1502_v14 = vld [vmem:[%s4187_s7 + $0x8] sm:$0xff]  ;;  %v3015_v34 = vld [vmem:[%s4188_s8] ss:$0 sm:$0xff] }
 0x575   : > { %v3411_v15 = vpack.c.bf16 %v1502_v14, %v1501_v13 }
 0x576   : > { %v1140_v36 = vmul.f32 1.442695, %v1135_v35 }
 0x577   : > { %v1130_v37 = vpop.xlane.xlu1 %1129 }
 0x578   : > { %3489 = vpow2.f32 %v1140_v36  ;;  %v1136_v38 = vsub.f32 %v1119_v19, %v1130_v37 }
 0x57a   : > { %v1142_v39 = vmul.f32 1.442695, %v1136_v38 }
 0x57b   : > { %v1175_v40 = vpop.permute.xlu1 %1174  ;;  %v1133_v41 = vpop.xlane.xlu0 %1132 }
 0x57c   : > { %3491 = vpow2.f32 %v1142_v39  ;;  %v1137_v42 = vsub.f32 %v1120_v24, %v1133_v41  ;;  %3234 = vmatpush3.msk.msra.mxu0 %vm1180_vm7, %v1175_v40 }
 0x57d   : > { %3243 = vmatprep.subr.mxu0 %v3552_v6 }
 0x57e   : > { %v1144_v43 = vmul.f32 1.442695, %v1137_v42 }
 0x580   : > { %3493 = vpow2.f32 %v1144_v43 }
 0x582   : > { %v3490_v44 = vpop.eup %3489 }
 0x583   : > { %v1147_v45 = vmul.f32 %v3490_v44, %v3841_v31  ;;  %v1616_v44 = vld [vmem:[%s4193_s13] sm:$0xff] }
 0x585   : > { %v1153_v46 = vsel %vm1121_vm6, %v1147_v45, 0.0 }
 0x586   : > { %v3492_v47 = vpop.eup %3491  ;;  %1154 = vadd.xlane.f32.xlu0 %v1153_v46  ;;  %v1618_v46 = vld [vmem:[%s4193_s13 + $0x10] sm:$0xff] }
 0x587   : > { %v1148_v48 = vmul.f32 %v3492_v47, %v3841_v31  ;;  %v1619_v47 = vld [vmem:[%s4193_s13 + $0x18] sm:$0xff] }
 0x589   : > { %v1156_v49 = vsel %vm1121_vm6, %v1148_v48, 0.0 }
 0x58a   : > { %v3494_v50 = vpop.eup %3493  ;;  %1157 = vadd.xlane.f32.xlu1 %v1156_v49  ;;  %v1701_v49 = vld [vmem:[%s4195_s15] sm:$0xff] }
 0x58b   : > { %v1149_v51 = vmul.f32 %v3494_v50, %v3841_v31  ;;  %v1702_v50 = vld [vmem:[%s4195_s15 + $0x8] sm:$0xff] }
 0x58d   : > { %v1159_v52 = vsel %vm1121_vm6, %v1149_v51, 0.0 }
 0x58e   : > { %1160 = vadd.xlane.f32.xlu0 %v1159_v52  ;;  %v3423_v52 = vpack.c.bf16 %v1702_v50, %v1701_v49 }
 0x59b   : > { %1330 = vrot.lane.b32.xlu1 %v3787_v54, %s4206_s2 }
 0x59f   : > { %1407 = vrot.lane.b32.xlu1 %v3791_v55, %s4206_s2 }
 0x5a4   : > { %1253 = vrot.lane.b32.xlu0 %v3783_v53, %s4206_s2 }
 0x5ac   : > { %v1152_v56 = vpop.xlane.xlu1 %1151 }
 0x5ad   : > { %v1162_v57 = vmax.f32 %v1152_v56, 1e-30  ;;  %v1704_v56 = vld [vmem:[%s4195_s15 + $0x18] sm:$0xff] }
 0x5af   : > { %3495 = vrcp.f32 %v1162_v57 }
 0x5b9   : > { %v3496_v58 = vpop.eup %3495 }
 0x5ba   : > { %v1170_v59 = vmul.f32 %v3496_v58, %v1146_v32  ;;  %v1705_v58 = vld [vmem:[%s4195_s15 + $0x20] sm:$0xff] }
 0x5bc   : > { %3236 = vmatmul.mubr.msk.f32.vlgmr.msra.gmra.mrb[2].mxu0 %vm1176_vm8, %v1170_v59  ;;  %v1706_v59 = vld [vmem:[%s4195_s15 + $0x28] sm:$0xff] }
 0x5bd   : > { %3245 = vmatprep.mubr.msk.f32.mxu0 %vm3551_vm0, %v3552_v6 }
 0x613   : > { %v1155_v60 = vpop.xlane.xlu0 %1154 }
 0x614   : > { %v1163_v61 = vmax.f32 %v1155_v60, 1e-30  ;;  %v3429_v60 = vpack.c.bf16 %v1706_v59, %v1705_v58 }
 0x616   : > { %3497 = vrcp.f32 %v1163_v61 }
 0x617   : > { %v1158_v54 = vpop.xlane.xlu1 %1157 }
 0x618   : > { %v1164_v62 = vmax.f32 %v1158_v54, 1e-30 }
 0x61a   : > { %3499 = vrcp.f32 %v1164_v62 }
 0x61b   : > { %v1331_v55 = vpop.permute.xlu1 %1330  ;;  %v1161_v63 = vpop.xlane.xlu0 %1160 }
 0x61c   : > { %v1165_v53 = vmax.f32 %v1161_v63, 1e-30  ;;  %3244 = vmatpush3.msk.msra.mxu0 %vm1180_vm7, %v1331_v55  ;;  %v3016_v63 = vld [vmem:[%s4191_s11] ss:$0 sm:$0xff] }
 0x61d   : > { %3422 = vmatprep.subr.bf16.mxu0 %v3550_v3 }
 0x61e   : > { %3501 = vrcp.f32 %v1165_v53 }
 0x61f   : > { %v1254_v0 = vpop.permute.xlu0 %1253  ;;  %v1408_v4 = vpop.permute.xlu1 %1407 }
 0x620   : > { %v3498_v1 = vpop.eup %3497  ;;  %3239 = vmatpush3.msk.msra.mxu1 %vm1180_vm7, %v1254_v0 }
 0x621   : > { %3248 = vmatprep.subr.mxu1 %v3552_v6  ;;  %v1171_v2 = vmul.f32 %v3498_v1, %v1147_v45 }
 0x623   : > { %3241 = vmatmul.mubr.msk.f32.vlgmr.msra.gmra.mrb[10].mxu1 %vm1176_vm8, %v1171_v2 }
 0x624   : > { %v3500_v7 = vpop.eup %3499  ;;  %3249 = vmatpush3.msk.msra.mxu1 %vm1180_vm7, %v1408_v4  ;;  %3250 = vmatprep.mubr.msk.f32.mxu1 %vm3551_vm0, %v3552_v6  ;;  %v1707_v4 = vld [vmem:[%s4195_s15 + $0x30] sm:$0xff] }
 0x625   : > { %v1172_v8 = vmul.f32 %v3500_v7, %v1148_v48  ;;  %3410 = vmatprep.subr.bf16.mxu1 %v3550_v3  ;;  %v3420_v48 = vpack.c.bf16 %v1619_v47, %v1618_v46  ;;  %v1708_v7 = vld [vmem:[%s4195_s15 + $0x38] sm:$0xff] }
 0x627   : > { %3246 = vmatmul.mubr.msk.f32.vlgmr.msra.gmra.mrb[4].mxu0 %vm1176_vm8, %v1172_v8  ;;  %v3432_v8 = vpack.c.bf16 %v1708_v7, %v1707_v4 }
 0x628   : > { %v3502_v9 = vpop.eup %3501  ;;  %3291 = vmatprep.mubr.msk.f32.mxu0 %vm3551_vm0, %v3552_v6  ;;  %3424 = vmatpush3.bf16.msra.mxu0 %v3423_v52 }
 0x629   : > { %v1173_v10 = vmul.f32 %v3502_v9, %v1149_v51  ;;  %v1703_v51 = vld [vmem:[%s4195_s15 + $0x10] sm:$0xff]  ;;  %3425 = vmatprep.subr.bf16.mxu0 %v3550_v3  ;;  %v3018_v9 = vld [vmem:[%s4194_s14] ss:$0 sm:$0xff] }
 0x62a   : > { %v3426_v57 = vpack.c.bf16 %v1704_v56, %v1703_v51 }
 0x62b   : > { %3251 = vmatmul.mubr.msk.f32.vlgmr.msra.gmra.mrb[12].mxu1 %vm1176_vm8, %v1173_v10 }
 0x62c   : > { %3261 = vmatprep.mubr.msk.f32.mxu1 %vm3551_vm0, %v3552_v6  ;;  %3412 = vmatpush3.bf16.msra.mxu1 %v3411_v15  ;;  %v3021_v15 = vld [vmem:[%s4196_s16] ss:$0 sm:$0xff] }
 0x62d   : > { %3413 = vmatprep.subr.bf16.mxu1 %v3550_v3  ;;  %3427 = vmatpush3.bf16.msra.mxu0 %v3426_v57 }
 0x62e   : > { %3428 = vmatprep.subr.bf16.mxu0 %v3550_v3 }
 0x630   : > { %3415 = vmatpush3.bf16.msra.mxu1 %v3414_v18 }
 0x631   : > { %3416 = vmatprep.subr.bf16.mxu1 %v3550_v3  ;;  %3430 = vmatpush3.bf16.msra.mxu0 %v3429_v60 }
 0x632   : > { %3431 = vmatprep.subr.bf16.mxu0 %v3550_v3 }
 0x635   : > { %3433 = vmatpush3.bf16.msra.mxu0 %v3432_v8 }
 0x636   : > { %3315 = vmatprep.subr.mxu0 %v3552_v6 }
 0x68f   : > { %v1249_v11 = vpop.f32.mrb[2].mxu0 }
 0x690   : > { %v3237_v12 = vpop.f32.mrb[3].mxu0 }
 0x6f6   : > { %v1326_v19 = vpop.f32.mrb[10].mxu1 }
 0x6f7   : > { %1485 = vrot.lane.b32.xlu0 %v1326_v19, %s4205_s28  ;;  %v3242_v20 = vpop.f32.mrb[11].mxu1  ;;  %s4219_s28 = sld [smem:[#allocation9_spill]] }
 0x6fa   : > { %v1403_v21 = vpop.f32.mrb[4].mxu0 }
 0x6fb   : > { %1489 = vrot.lane.b32.xlu1 %v1403_v21, %s4204_s0  ;;  %v3247_v22 = vpop.f32.mrb[5].mxu0 }
 0x6fd   : > { %v3017_v0 = vld [vmem:[%s4219_s28] ss:$0 sm:$0xff] }
 0x6fe   : > { %v1480_v23 = vpop.f32.mrb[12].mxu1 }
 0x6ff   : > { %1493 = vrot.lane.b32.xlu0 %v1480_v23, %s4203_s30  ;;  %v3252_v24 = vpop.f32.mrb[13].mxu1  ;;  %s4223_s30 = smov 24  }
 0x769   : > { %v1486_v25 = vpop.permute.xlu0 %1485 }
 0x76a   : > { %v1496_v28 = vsel %vm810_vm4, %v1249_v11, %v1486_v25  ;;  %v3026_v25 = vld [vmem:[%s4185_s5 + $0x20] sm:$0xff] }
 0x76d   : > { %v1490_v26 = vpop.permute.xlu1 %1489 }
 0x76e   : > { %v1498_v29 = vsel %vm1497_vm9, %v1496_v28, %v1490_v26  ;;  %v3027_v26 = vld [vmem:[%s4185_s5 + $0x28] sm:$0xff] }
 0x76f   : > { %v3435_v28 = vpack.c.bf16 %v3027_v26, %v3026_v25 }
 0x771   : > { %v1494_v30 = vpop.permute.xlu0 %1493 }
 0x772   : > { %v1500_v32 = vsel %vm1499_vm10, %v1498_v29, %v1494_v30  ;;  %v3028_v29 = vld [vmem:[%s4185_s5 + $0x30] sm:$0xff]  ;;  %v3029_v30 = vld [vmem:[%s4185_s5 + $0x38] sm:$0xff] }
 0x773   : > { %3262 = vmatmul.mubr.msk.f32.vlgmr.msra.gmra.mrb[14].mxu1 %vm727_vm3, %v1500_v32  ;;  %v3438_v32 = vpack.c.bf16 %v3029_v30, %v3028_v29 }
 0x774   : > { %3272 = vmatprep.mubr.msk.f32.mxu1 %vm3551_vm0, %v3552_v6 }
 0x846   : > { %v1574_v33 = vpop.f32.mrb[14].mxu1 }
 0x847   : > { %v1578_v35 = vadd.f32 %v1574_v33, %v3741_v27  ;;  %v3263_v36 = vpop.f32.mrb[15].mxu1  ;;  %v1617_v27 = vld [vmem:[%s4193_s13 + $0x8] sm:$0xff] }
 0x848   : > { %v3417_v45 = vpack.c.bf16 %v1617_v27, %v1616_v44 }
 0x849   : > { %v1586_v37 = vadd.f32 %v3015_v34, %v1578_v35 }
 0x84a   : > { %3418 = vmatpush3.bf16.msra.mxu1 %v3417_v45 }
 0x84b   : > { %v1589_v38 = vsel %vm687_vm2, %v1586_v37, 0.0  ;;  %3419 = vmatprep.subr.bf16.mxu1 %v3550_v3 }
 0x84c   : > { %1590 = vadd.xlane.f32.xlu1 %v1589_v38 }
 0x84e   : > { %3421 = vmatpush3.bf16.msra.mxu1 %v3420_v48 }
 0x84f   : > { %3434 = vmatprep.subr.bf16.mxu1 %v3550_v3 }
 0x8d9   : > { %v1591_v39 = vpop.xlane.xlu1 %1590 }
 0x8da   : > { %v1592_v40 = vmul.f32 0.03125, %v1591_v39  ;;  %v3025_v39 = vld [vmem:[%s4190_s10 + $0x1] ss:$0 sm:$0xff] }
 0x8dc   : > { %v1593_v41 = vsub.f32 %v1586_v37, %v1592_v40 }
 0x8de   : > { %v1594_v42 = vmul.f32 %v1593_v41, %v1593_v41 }
 0x8e0   : > { %v1595_v43 = vsel %vm687_vm2, %v1594_v42, 0.0  ;;  %v3031_v42 = vld [vmem:[%s4186_s6 + $0x1] ss:$0 sm:$0xff] }
 0x8e1   : > { %1596 = vadd.xlane.f32.xlu0 %v1595_v43 }
 0x96e   : > { %v1597_v61 = vpop.xlane.xlu0 %1596 }
 0x96f   : > { %v1598_v54 = vmul.f32 0.03125, %v1597_v61 }
 0x971   : > { %v1599_v62 = vadd.f32 1e-05, %v1598_v54 }
 0x973   : > { %3503 = vrsqrt.f32 %v1599_v62 }
 0x97d   : > { %v3504_v55 = vpop.eup %3503 }
 0x97e   : > { %v1601_v53 = vmul.f32 %v3504_v55, %v1593_v41 }
 0x980   : > { %v1608_v1 = vmul.f32 %v3016_v63, %v1601_v53 }
 0x982   : > { %v1615_v2 = vadd.f32 %v3017_v0, %v1608_v1 }
 0x984   : > { %3273 = vmatmul.mubr.msk.f32.vlgmr.msra.gmra.mrb[16].mxu1 %vm727_vm3, %v1615_v2 }
 0x985   : > { %3302 = vmatprep.mubr.msk.f32.mxu1 %vm3551_vm0, %v3552_v6  ;;  %3436 = vmatpush3.bf16.msra.mxu1 %v3435_v28 }
 0x986   : > { %3437 = vmatprep.subr.bf16.mxu1 %v3550_v3 }
 0x989   : > { %3439 = vmatpush3.bf16.msra.mxu1 %v3438_v32 }
 0x98a   : > { %3305 = vmatprep.subr.mxu1 %v3552_v6 }
 0xa57   : > { %v1696_v10 = vpop.f32.mrb[16].mxu1 }
 0xa58   : > { %v1697_v11 = vadd.f32 %v3018_v9, %v1696_v10  ;;  %v3274_v12 = vpop.f32.mrb[17].mxu1 }
 0xa5a   : > { %v1700_v13 = vmax.f32 %v1697_v11, 0.0 }
 0xa5c   : > { %3292 = vmatmul.mubr.msk.f32.vlgmr.msra.gmra.mrb[6].mxu0 %vm1709_vm11, %v1700_v13 }
 0xa5d   : > { %3317 = vmatprep.mubr.msk.f32.mxu0 %vm3551_vm0, %v3552_v6 }
 0xb2f   : > { %v1779_v14 = vpop.f32.mrb[6].mxu0 }
 0xb30   : > { %v1783_v16 = vadd.f32 %v1779_v14, %v1586_v37  ;;  %v3293_v17 = vpop.f32.mrb[7].mxu0  ;;  %v3024_v37 = vld [vmem:[%s4189_s9 + $0x1] ss:$0 sm:$0xff] }
 0xb32   : > { %v3966_v18 = vadd.f32 %v3021_v15, %v1783_v16 }
 0xb34   : > { %v1796_v19 = vsel %vm687_vm2, %v3966_v18, 0.0 }
 0xb35   : > { %1797 = vadd.xlane.f32.xlu0 %v1796_v19 }
 0xbc2   : > { %v1798_v20 = vpop.xlane.xlu0 %1797 }
 0xbc3   : > { %v1799_v21 = vmul.f32 0.03125, %v1798_v20 }
 0xbc5   : > { %v1800_v22 = vsub.f32 %v3966_v18, %v1799_v21 }
 0xbc7   : > { %v1801_v23 = vmul.f32 %v1800_v22, %v1800_v22 }
 0xbc9   : > { %v1802_v24 = vsel %vm687_vm2, %v1801_v23, 0.0 }
 0xbca   : > { %1803 = vadd.xlane.f32.xlu1 %v1802_v24 }
 0xc57   : > { %v1804_v33 = vpop.xlane.xlu1 %1803 }
 0xc58   : > { %v1805_v34 = vmul.f32 0.03125, %v1804_v33 }
 0xc5a   : > { %v1806_v35 = vadd.f32 1e-05, %v1805_v34 }
 0xc5c   : > { %3505 = vrsqrt.f32 %v1806_v35 }
 0xc66   : > { %v3506_v36 = vpop.eup %3505 }
 0xc67   : > { %v1808_v38 = vmul.f32 %v3506_v36, %v1800_v22 }
 0xc69   : > { %v1815_v40 = vmul.f32 %v3024_v37, %v1808_v38 }
 0xc6b   : > { %v1822_v41 = vadd.f32 %v3025_v39, %v1815_v40 }
 0xc6d   : > { %3303 = vmatmul.mubr.msk.f32.vlgmr.msra.gmra.mrb[18].mxu1 %vm727_vm3, %v1822_v41 }
 0xc6e   : > { %3307 = vmatprep.mubr.msk.f32.mxu1 %vm3551_vm0, %v3552_v6 }
 0xd40   : > { %v1905_v43 = vpop.f32.mrb[18].mxu1 }
 0xd41   : > { %v1906_v44 = vadd.f32 %v3031_v42, %v1905_v43  ;;  %v3304_v27 = vpop.f32.mrb[19].mxu1 }
 0xd43   : > { %1912 = vrot.lane.b32.xlu1 %v1906_v44, %s3555_s3  ;;  %1910 = vrot.lane.b32.xlu0 %v1906_v44, %s3554_s25  ;;  %s4224_s3 = sshll.u32 %s3716_s29, 3 }
 0xd44   : > { %s577_s20 = scalar_lea.vmem %s4199_s19, %s4224_s3 }
 0xd47   : > { %1914 = vrot.lane.b32.xlu1 %v1906_v44, %s3553_s23  ;;  %1916 = vrot.lane.b32.xlu0 %v1906_v44, %s3556_s26  ;;  %s4220_s23 = smov 64  }
 0xdb5   : > { %v4002_v45 = vpop.permute.xlu1 %1912  ;;  %v4004_v46 = vpop.permute.xlu0 %1910 }
 0xdb6   : > { %2068 = vrot.lane.b32.xlu0 %v4002_v45, %s3556_s26  ;;  %1992 = vrot.lane.b32.xlu1 %v4004_v46, %s3556_s26 }
 0xdb9   : > { %v4010_v47 = vpop.permute.xlu1 %1914  ;;  %v1917_v48 = vpop.permute.xlu0 %1916 }
 0xdba   : > { %2144 = vrot.lane.b32.xlu1 %v4010_v47, %s3556_s26  ;;  %3306 = vmatpush3.xpose.msk.msra.mxu1 %vm810_vm4, %v1917_v48 }
 0xdbb   : > { %3310 = vmatprep.subr.mxu1 %v3552_v6 }
 0xdbd   : > { %3308 = vmatmul.mubr.msk.f32.vlgmr.msra.gmra.mrb[20].mxu1 %vm810_vm4, %v1906_v44 }
 0xdbe   : > { %3312 = vmatprep.mubr.msk.f32.mxu1 %vm3551_vm0, %v3552_v6 }
 0xe28   : > { %v1993_v49 = vpop.permute.xlu1 %1992  ;;  %v2069_v50 = vpop.permute.xlu0 %2068 }
 0xe29   : > { %3311 = vmatpush3.xpose.msk.msra.mxu1 %vm810_vm4, %v1993_v49  ;;  %3316 = vmatpush3.xpose.msk.msra.mxu0 %vm810_vm4, %v2069_v50 }
 0xe2a   : > { %3320 = vmatprep.subr.mxu1 %v3552_v6  ;;  %3325 = vmatprep.subr.mxu0 %v3552_v6 }
 0xe2c   : > { %v2145_v51 = vpop.permute.xlu1 %2144  ;;  %3313 = vmatmul.mubr.msk.f32.vlgmr.msra.gmra.mrb[22].mxu1 %vm810_vm4, %v4004_v46  ;;  %3318 = vmatmul.mubr.msk.f32.vlgmr.msra.gmra.mrb[8].mxu0 %vm810_vm4, %v4002_v45 }
 0xe2d   : > { %3321 = vmatpush3.xpose.msk.msra.mxu1 %vm810_vm4, %v2145_v51  ;;  %3322 = vmatprep.mubr.msk.f32.mxu1 %vm3551_vm0, %v3552_v6 }
 0xe2e   : > { %3327 = vmatprep.mubr.msk.f32.mxu0 %vm3551_vm0, %v3552_v6  ;;  %3330 = vmatprep.subr.mxu1 %v3552_v6 }
 0xe30   : > { %3323 = vmatmul.mubr.msk.f32.vlgmr.msra.gmra.mrb[24].mxu1 %vm810_vm4, %v4010_v47 }
 0xe31   : > { %3332 = vmatprep.mubr.msk.f32.mxu1 %vm3551_vm0, %v3552_v6 }
 0xe90   : > { %v1988_v52 = vpop.f32.mrb[20].mxu1 }
 0xe91   : > { %v2220_v56 = vmul.f32 0.35355338, %v1988_v52  ;;  %v3309_v57 = vpop.f32.mrb[21].mxu1 }
 0xe93   : > { %v2224_v58 = vadd.f32 %v2220_v56, %v3826_v5 }
 0xe95   : > { %v2228_v59 = vsel %vm1121_vm6, %v2224_v58, -inf }
 0xe96   : > { %2229 = vmax.xlane.f32.xlu0 %v2228_v59  ;;  %v3050_v59 = vld [vmem:[%s4187_s7 + $0x28] sm:$0xff] }
 0xeff   : > { %v2064_v60 = vpop.f32.mrb[22].mxu1  ;;  %v2140_v61 = vpop.f32.mrb[8].mxu0 }
 0xf00   : > { %v2221_v54 = vmul.f32 0.35355338, %v2064_v60  ;;  %v2222_v62 = vmul.f32 0.35355338, %v2140_v61  ;;  %v3314_v55 = vpop.f32.mrb[23].mxu1  ;;  %v3319_v63 = vpop.f32.mrb[9].mxu0 }
 0xf01   : > { %v3052_v55 = vld [vmem:[%s4187_s7 + $0x38] sm:$0xff] }
 0xf02   : > { %v2225_v53 = vadd.f32 %v2221_v54, %v3826_v5  ;;  %v2226_v0 = vadd.f32 %v2222_v62, %v3826_v5  ;;  %v3051_v62 = vld [vmem:[%s4187_s7 + $0x30] sm:$0xff] }
 0xf03   : > { %v2216_v1 = vpop.f32.mrb[24].mxu1  ;;  %v3444_v63 = vpack.c.bf16 %v3052_v55, %v3051_v62 }
 0xf04   : > { %v2223_v2 = vmul.f32 0.35355338, %v2216_v1  ;;  %v3324_v4 = vpop.f32.mrb[25].mxu1  ;;  %v2231_v7 = vsel %vm1121_vm6, %v2225_v53, -inf  ;;  %v2234_v8 = vsel %vm1121_vm6, %v2226_v0, -inf }
 0xf05   : > { %2232 = vmax.xlane.f32.xlu1 %v2231_v7  ;;  %2235 = vmax.xlane.f32.xlu0 %v2234_v8 }
 0xf06   : > { %v2227_v9 = vadd.f32 %v2223_v2, %v3826_v5 }
 0xf08   : > { %v2237_v10 = vsel %vm1121_vm6, %v2227_v9, -inf }
 0xf09   : > { %2238 = vmax.xlane.f32.xlu0 %v2237_v10 }
 0xf16   : > { %2280 = vrot.lane.b32.xlu1 %v1906_v44, %s4220_s23 }
 0xf23   : > { %v2230_v11 = vpop.xlane.xlu0 %2229 }
 0xf24   : > { %v2240_v12 = vsub.f32 %v2224_v58, %v2230_v11  ;;  %v3049_v58 = vld [vmem:[%s4187_s7 + $0x20] sm:$0xff] }
 0xf25   : > { %v3441_v60 = vpack.c.bf16 %v3050_v59, %v3049_v58  ;;  %v3077_v58 = vld [vmem:[%s4196_s16 + $0x1] ss:$0 sm:$0xff] }
 0xf26   : > { %v2244_v13 = vmul.f32 1.442695, %v2240_v12 }
 0xf28   : > { %3507 = vpow2.f32 %v2244_v13 }
 0xf32   : > { %v3508_v14 = vpop.eup %3507 }
 0xf33   : > { %v2252_v15 = vmul.f32 %v3508_v14, %v3841_v31 }
 0xf35   : > { %v2256_v16 = vsel %vm1121_vm6, %v2252_v15, 0.0 }
 0xf3a   : > { %2257 = vadd.xlane.f32.xlu1 %v2256_v16 }
 0xf92   : > { %v2233_v17 = vpop.xlane.xlu1 %2232  ;;  %v2236_v19 = vpop.xlane.xlu0 %2235 }
 0xf93   : > { %v2241_v20 = vsub.f32 %v2225_v53, %v2233_v17  ;;  %v2242_v21 = vsub.f32 %v2226_v0, %v2236_v19 }
 0xf95   : > { %v2246_v5 = vmul.f32 1.442695, %v2241_v20  ;;  %v2248_v22 = vmul.f32 1.442695, %v2242_v21 }
 0xf96   : > { %v2281_v23 = vpop.permute.xlu1 %2280  ;;  %v2239_v24 = vpop.xlane.xlu0 %2238 }
 0xf97   : > { %3509 = vpow2.f32 %v2246_v5  ;;  %v2243_v25 = vsub.f32 %v2227_v9, %v2239_v24  ;;  %3326 = vmatpush3.msk.msra.mxu0 %vm1180_vm7, %v2281_v23 }
 0xf98   : > { %3511 = vpow2.f32 %v2248_v22  ;;  %3335 = vmatprep.subr.mxu0 %v3552_v6 }
 0xf99   : > { %v2250_v26 = vmul.f32 1.442695, %v2243_v25 }
 0xf9b   : > { %3513 = vpow2.f32 %v2250_v26  ;;  %v3062_v26 = vld [vmem:[%s4193_s13 + $0x30] sm:$0xff] }
 0xfa1   : > { %v3510_v28 = vpop.eup %3509 }
 0xfa2   : > { %v3512_v29 = vpop.eup %3511  ;;  %v2253_v30 = vmul.f32 %v3510_v28, %v3841_v31  ;;  %v3063_v28 = vld [vmem:[%s4193_s13 + $0x38] sm:$0xff] }
 0xfa3   : > { %v2254_v32 = vmul.f32 %v3512_v29, %v3841_v31  ;;  %v3450_v29 = vpack.c.bf16 %v3063_v28, %v3062_v26 }
 0xfa4   : > { %v2259_v33 = vsel %vm1121_vm6, %v2253_v30, 0.0 }
 0xfa5   : > { %v3514_v34 = vpop.eup %3513  ;;  %2260 = vadd.xlane.f32.xlu0 %v2259_v33  ;;  %v2262_v35 = vsel %vm1121_vm6, %v2254_v32, 0.0  ;;  %v3069_v33 = vld [vmem:[%s4195_s15 + $0x50] sm:$0xff] }
 0xfa6   : > { %2263 = vadd.xlane.f32.xlu1 %v2262_v35  ;;  %v2255_v36 = vmul.f32 %v3514_v34, %v3841_v31  ;;  %v3070_v35 = vld [vmem:[%s4195_s15 + $0x58] sm:$0xff] }
 0xfa8   : > { %v2265_v37 = vsel %vm1121_vm6, %v2255_v36, 0.0 }
 0xfa9   : > { %2266 = vadd.xlane.f32.xlu0 %v2265_v37  ;;  %v3071_v37 = vld [vmem:[%s4195_s15 + $0x60] sm:$0xff] }
 0xfb7   : > { %2434 = vrot.lane.b32.xlu1 %v4002_v45, %s4220_s23 }
 0xfbb   : > { %2511 = vrot.lane.b32.xlu1 %v4010_v47, %s4220_s23 }
 0xfbf   : > { %2357 = vrot.lane.b32.xlu0 %v4004_v46, %s4220_s23 }
 0xfc7   : > { %v2258_v38 = vpop.xlane.xlu1 %2257 }
 0xfc8   : > { %v2268_v39 = vmax.f32 %v2258_v38, 1e-30  ;;  %v3072_v38 = vld [vmem:[%s4195_s15 + $0x68] sm:$0xff] }
 0xfca   : > { %3515 = vrcp.f32 %v2268_v39  ;;  %v3459_v39 = vpack.c.bf16 %v3072_v38, %v3071_v37 }
 0xfd4   : > { %v3516_v40 = vpop.eup %3515 }
 0xfd5   : > { %v2276_v41 = vmul.f32 %v3516_v40, %v2252_v15  ;;  %v3055_v15 = vld [vmem:[%s4188_s8 + $0x1] ss:$0 sm:$0xff] }
 0xfd7   : > { %3328 = vmatmul.mubr.msk.f32.vlgmr.msra.gmra.mrb[10].mxu0 %vm1176_vm8, %v2276_v41 }
 0xfd8   : > { %3337 = vmatprep.mubr.msk.f32.mxu0 %vm3551_vm0, %v3552_v6 }
0x1032   : > { %v2261_v31 = vpop.xlane.xlu0 %2260 }
0x1033   : > { %v2264_v42 = vpop.xlane.xlu1 %2263  ;;  %v2269_v43 = vmax.f32 %v2261_v31, 1e-30 }
0x1034   : > { %v2270_v44 = vmax.f32 %v2264_v42, 1e-30 }
0x1035   : > { %3517 = vrcp.f32 %v2269_v43  ;;  %v3058_v43 = vld [vmem:[%s4191_s11 + $0x1] ss:$0 sm:$0xff] }
0x1036   : > { %3519 = vrcp.f32 %v2270_v44  ;;  %v2267_v27 = vpop.xlane.xlu0 %2266 }
0x1037   : > { %v2435_v45 = vpop.permute.xlu1 %2434  ;;  %v2271_v47 = vmax.f32 %v2267_v27, 1e-30  ;;  %v3059_v27 = vld [vmem:[%s4219_s28 + $0x1] ss:$0 sm:$0xff] }
0x1038   : > { %3336 = vmatpush3.msk.msra.mxu0 %vm1180_vm7, %v2435_v45 }
0x1039   : > { %3521 = vrcp.f32 %v2271_v47  ;;  %3440 = vmatprep.subr.bf16.mxu0 %v3550_v3 }
0x103a   : > { %v2358_v46 = vpop.permute.xlu0 %2357 }
0x103b   : > { %3331 = vmatpush3.msk.msra.mxu1 %vm1180_vm7, %v2358_v46  ;;  %v2512_v52 = vpop.permute.xlu1 %2511  ;;  %v3074_v46 = vld [vmem:[%s4195_s15 + $0x78] sm:$0xff] }
0x103c   : > { %3340 = vmatprep.subr.mxu1 %v3552_v6 }
0x103f   : > { %v3518_v48 = vpop.eup %3517 }
0x1040   : > { %v3520_v49 = vpop.eup %3519  ;;  %v2277_v50 = vmul.f32 %v3518_v48, %v2253_v30  ;;  %v3067_v30 = vld [vmem:[%s4195_s15 + $0x40] sm:$0xff] }
0x1041   : > { %v2278_v51 = vmul.f32 %v3520_v49, %v2254_v32  ;;  %v3068_v32 = vld [vmem:[%s4195_s15 + $0x48] sm:$0xff]  ;;  %v3065_v49 = vld [vmem:[%s4194_s14 + $0x1] ss:$0 sm:$0xff] }
0x1042   : > { %3333 = vmatmul.mubr.msk.f32.vlgmr.msra.gmra.mrb[26].mxu1 %vm1176_vm8, %v2277_v50  ;;  %v3453_v34 = vpack.c.bf16 %v3068_v32, %v3067_v30 }
0x1043   : > { %v3522_v56 = vpop.eup %3521  ;;  %3338 = vmatmul.mubr.msk.f32.vlgmr.msra.gmra.mrb[12].mxu0 %vm1176_vm8, %v2278_v51  ;;  %3341 = vmatpush3.msk.msra.mxu1 %vm1180_vm7, %v2512_v52 }
0x1044   : > { %3342 = vmatprep.mubr.msk.f32.mxu1 %vm3551_vm0, %v3552_v6  ;;  %v2279_v57 = vmul.f32 %v3522_v56, %v2255_v36  ;;  %3353 = vmatprep.mubr.msk.f32.mxu0 %vm3551_vm0, %v3552_v6  ;;  %v3456_v36 = vpack.c.bf16 %v3070_v35, %v3069_v33 }
0x1045   : > { %3446 = vmatprep.subr.bf16.mxu1 %v3550_v3  ;;  %3442 = vmatpush3.bf16.msra.mxu0 %v3441_v60 }
0x1046   : > { %3343 = vmatmul.mubr.msk.f32.vlgmr.msra.gmra.mrb[28].mxu1 %vm1176_vm8, %v2279_v57  ;;  %3443 = vmatprep.subr.bf16.mxu0 %v3550_v3 }
0x1047   : > { %3364 = vmatprep.mubr.msk.f32.mxu1 %vm3551_vm0, %v3552_v6 }
0x1049   : > { %3445 = vmatpush3.bf16.msra.mxu0 %v3444_v63 }
0x104a   : > { %3452 = vmatprep.subr.bf16.mxu0 %v3550_v3 }
0x10aa   : > { %v2353_v61 = vpop.f32.mrb[10].mxu0 }
0x10ab   : > { %v3329_v54 = vpop.f32.mrb[11].mxu0 }
0x1115   : > { %v2430_v53 = vpop.f32.mrb[26].mxu1 }
0x1116   : > { %v2507_v0 = vpop.f32.mrb[12].mxu0  ;;  %2589 = vrot.lane.b32.xlu0 %v2430_v53, %s4221_s27  ;;  %v3334_v1 = vpop.f32.mrb[27].mxu1 }
0x1117   : > { %2593 = vrot.lane.b32.xlu1 %v2507_v0, %s4222_s1  ;;  %v3339_v2 = vpop.f32.mrb[13].mxu0 }
0x1119   : > { %v2584_v4 = vpop.f32.mrb[28].mxu1 }
0x111a   : > { %2597 = vrot.lane.b32.xlu0 %v2584_v4, %s4223_s30  ;;  %v3344_v7 = vpop.f32.mrb[29].mxu1 }
0x1188   : > { %v2590_v8 = vpop.permute.xlu0 %2589 }
0x1189   : > { %v2600_v9 = vsel %vm810_vm4, %v2353_v61, %v2590_v8  ;;  %v2594_v10 = vpop.permute.xlu1 %2593  ;;  %v3078_v8 = vld [vmem:[%s4197_s17] ss:$0 sm:$0xff] }
0x118a   : > { %v2601_v11 = vsel %vm1497_vm9, %v2600_v9, %v2594_v10  ;;  %v3079_v10 = vld [vmem:[%s4198_s18] ss:$0 sm:$0xff] }
0x118c   : > { %v2598_v12 = vpop.permute.xlu0 %2597 }
0x118d   : > { %v2602_v13 = vsel %vm1499_vm10, %v2601_v11, %v2598_v12 }
0x118e   : > { %3354 = vmatmul.mubr.msk.f32.vlgmr.msra.gmra.mrb[14].mxu0 %vm727_vm3, %v2602_v13 }
0x118f   : > { %3383 = vmatprep.mubr.msk.f32.mxu0 %vm3551_vm0, %v3552_v6  ;;  %v3060_v6 = vld [vmem:[%s4193_s13 + $0x20] sm:$0xff]  ;;  %3454 = vmatpush3.bf16.msra.mxu0 %v3453_v34 }
0x1190   : > { %3455 = vmatprep.subr.bf16.mxu0 %v3550_v3 }
0x1193   : > { %3457 = vmatpush3.bf16.msra.mxu0 %v3456_v36 }
0x1194   : > { %3458 = vmatprep.subr.bf16.mxu0 %v3550_v3 }
0x1197   : > { %3460 = vmatpush3.bf16.msra.mxu0 %v3459_v39 }
0x1198   : > { %3461 = vmatprep.subr.bf16.mxu0 %v3550_v3 }
0x1261   : > { %v2677_v14 = vpop.f32.mrb[14].mxu0 }
0x1262   : > { %v2681_v16 = vadd.f32 %v2677_v14, %v3966_v18  ;;  %v3355_v17 = vpop.f32.mrb[15].mxu0  ;;  %v3061_v18 = vld [vmem:[%s4193_s13 + $0x28] sm:$0xff] }
0x1263   : > { %v3447_v25 = vpack.c.bf16 %v3061_v18, %v3060_v6 }
0x1264   : > { %v2690_v19 = vadd.f32 %v3055_v15, %v2681_v16 }
0x1265   : > { %3448 = vmatpush3.bf16.msra.mxu1 %v3447_v25 }
0x1266   : > { %v2695_v20 = vsel %vm687_vm2, %v2690_v19, 0.0  ;;  %3449 = vmatprep.subr.bf16.mxu1 %v3550_v3  ;;  %v3073_v3 = vld [vmem:[%s4195_s15 + $0x70] sm:$0xff] }
0x1267   : > { %2696 = vadd.xlane.f32.xlu1 %v2695_v20  ;;  %v3462_v48 = vpack.c.bf16 %v3074_v46, %v3073_v3 }
0x1269   : > { %3451 = vmatpush3.bf16.msra.mxu1 %v3450_v29  ;;  %3463 = vmatpush3.bf16.msra.mxu0 %v3462_v48 }
0x12f4   : > { %v2697_v21 = vpop.xlane.xlu1 %2696 }
0x12f5   : > { %v2698_v5 = vmul.f32 0.03125, %v2697_v21 }
0x12f7   : > { %v2699_v22 = vsub.f32 %v2690_v19, %v2698_v5 }
0x12f9   : > { %v2700_v23 = vmul.f32 %v2699_v22, %v2699_v22 }
0x12fb   : > { %v2701_v24 = vsel %vm687_vm2, %v2700_v23, 0.0 }
0x12fc   : > { %2702 = vadd.xlane.f32.xlu0 %v2701_v24 }
0x1389   : > { %v2703_v40 = vpop.xlane.xlu0 %2702 }
0x138a   : > { %v2704_v41 = vmul.f32 0.03125, %v2703_v40 }
0x138c   : > { %v2705_v31 = vadd.f32 1e-05, %v2704_v41 }
0x138e   : > { %3523 = vrsqrt.f32 %v2705_v31 }
0x1398   : > { %v3524_v42 = vpop.eup %3523 }
0x1399   : > { %v2707_v44 = vmul.f32 %v3524_v42, %v2699_v22 }
0x139b   : > { %v2714_v45 = vmul.f32 %v3058_v43, %v2707_v44 }
0x139d   : > { %v2721_v47 = vadd.f32 %v3059_v27, %v2714_v45 }
0x139f   : > { %3365 = vmatmul.mubr.msk.f32.vlgmr.msra.gmra.mrb[30].mxu1 %vm727_vm3, %v2721_v47 }
0x1472   : > { %v2804_v50 = vpop.f32.mrb[30].mxu1 }
0x1473   : > { %v2805_v51 = vadd.f32 %v3065_v49, %v2804_v50  ;;  %v3366_v52 = vpop.f32.mrb[31].mxu1 }
0x1475   : > { %v2808_v56 = vmax.f32 %v2805_v51, 0.0 }
0x1477   : > { %3384 = vmatmul.mubr.msk.f32.vlgmr.msra.gmra.mrb[16].mxu0 %vm1709_vm11, %v2808_v56 }
0x154a   : > { %v2887_v57 = vpop.f32.mrb[16].mxu0 }
0x154b   : > { %v2891_v59 = vadd.f32 %v2887_v57, %v2690_v19  ;;  %v3385_v60 = vpop.f32.mrb[17].mxu0 }
0x154d   : > { %v2900_v61 = vadd.f32 %v3077_v58, %v2891_v59 }
0x154f   : > { %v2903_v54 = vsel %vm687_vm2, %v2900_v61, 0.0 }
0x1550   : > { %2904 = vadd.xlane.f32.xlu0 %v2903_v54 }
0x15dd   : > { %v2905_v62 = vpop.xlane.xlu0 %2904 }
0x15de   : > { %v2906_v55 = vmul.f32 0.03125, %v2905_v62 }
0x15e0   : > { %v2907_v63 = vsub.f32 %v2900_v61, %v2906_v55 }
0x15e2   : > { %v2908_v53 = vmul.f32 %v2907_v63, %v2907_v63 }
0x15e4   : > { %v2909_v0 = vsel %vm687_vm2, %v2908_v53, 0.0 }
0x15e5   : > { %2910 = vadd.xlane.f32.xlu1 %v2909_v0 }
0x1672   : > { %v2911_v1 = vpop.xlane.xlu1 %2910 }
0x1673   : > { %v2912_v2 = vmul.f32 0.03125, %v2911_v1 }
0x1675   : > { %v2913_v4 = vadd.f32 1e-05, %v2912_v2 }
0x1677   : > { %3525 = vrsqrt.f32 %v2913_v4 }
0x1681   : > { %v3526_v7 = vpop.eup %3525 }
0x1682   : > { %v2915_v9 = vmul.f32 %v3526_v7, %v2907_v63 }
0x1684   : > { %v2922_v11 = vmul.f32 %v3078_v8, %v2915_v9 }
0x1686   : > { %v2929_v12 = vadd.f32 %v3079_v10, %v2922_v11 }
0x1688   : > { %2930 = vst.msk [vmem:[%s577_s20] sm:$0x7f] %vm687_vm2, %v2929_v12 }
0x1689 PF: > { %s35_s22 = sadd.s32 1, %s3547_s22  }
0x168a   : > { %p32_p9 = scmp.ge.s32.totalorder %s35_s22, 4  }
0x168c   :  { %34 = sbr.rel (!%p32_p9) target bundleno = 23 (0x17), region = 134 }

</bundles_post_ra>
